<compile_context>
chip_gen: v7x
topology: tpu7x:2x2x1
jax: 0.10.0
libtpu: 0.0.40
codegen_flags: <defaults>
</compile_context>

<pallas_src>
import functools
import math

import jax
import jax.numpy as jnp
from jax.experimental import pallas as pl
from jax.experimental.pallas import tpu as pltpu

EPS = 1e-6  # timm ViT LayerNorm eps


# ----------------------------------------------------------------------------
# in-kernel helpers
# ----------------------------------------------------------------------------
def _erf(x):
    # Abramowitz & Stegun 7.1.26 polynomial approximation, |err| <= 1.5e-7.
    # exp() goes to the EUP slot.  (Close to exact erf within f32 rounding.)
    a1, a2, a3, a4, a5 = 0.254829592, -0.284496736, 1.421413741, -1.453152027, 1.061405429
    p = 0.3275911
    s = jnp.where(x >= 0.0, 1.0, -1.0)
    ax = jnp.abs(x)
    t = 1.0 / (1.0 + p * ax)
    poly = ((((a5 * t + a4) * t + a3) * t + a2) * t + a1) * t
    y = 1.0 - poly * jnp.exp(-ax * ax)
    return s * y


def _gelu(x):
    # exact (erf-based) GELU, matching PyTorch nn.GELU() default.
    # (On v5e a tanh-approx GELU would move more work to the idle EUP slot.)
    return 0.5 * x * (1.0 + _erf(x * (1.0 / math.sqrt(2.0))))


def _ln(v, g, b):
    mu = jnp.mean(v, axis=-1, keepdims=True)
    var = jnp.mean((v - mu) ** 2, axis=-1, keepdims=True)
    return (v - mu) * jax.lax.rsqrt(var + EPS) * g + b


def _dot(a, b):
    return jnp.dot(a, b, preferred_element_type=jnp.float32)


# ----------------------------------------------------------------------------
# fully fused forward-pass kernel (one grid step = one batch chunk)
# ----------------------------------------------------------------------------
def fused_vit_kernel(
    # inputs
    patches_ref, scatter_ref, base_ref, mask_ref, pool_ref, cls_sel_ref,
    patch_w_ref, patch_b_ref,
    ln1_g_ref, ln1_b_ref, qkv_w_ref, qkv_b_ref, proj_w_ref, proj_b_ref,
    ln2_g_ref, ln2_b_ref, fc1_w_ref, fc1_b_ref, fc2_w_ref, fc2_b_ref,
    norm_g_ref, norm_b_ref, head_w_ref, head_b_ref,
    # outputs
    out_ref,
    # scratch
    tok_ref, mid0_ref, mid1_ref,
    *, num_heads, head_dim, depth, taps,
):
    D = num_heads * head_dim

    # ---- patch embed + cls token + pos embed into the padded, batch-folded
    #      token buffer via one scatter matmul (no misaligned row writes) ----
    emb = _dot(patches_ref[0], patch_w_ref[...]) + patch_b_ref[...]   # (CB*Np, D)
    tok_ref[...] = _dot(scatter_ref[...], emb) + base_ref[...]        # (rows, D)
    # pos_drop: dropout is identity at inference time.

    mask = mask_ref[...]  # additive f32 mask: 0 on same-batch valid keys, -1e30 else

    def block_body(d, carry):
        x = tok_ref[...]                                     # (rows, D)

        # ----- multi-head self-attention (per-head lane slices, no concats) -----
        ln1_g = ln1_g_ref[d]
        ln1_b = ln1_b_ref[d]
        h = _ln(x, ln1_g, ln1_b)
        qkv = _dot(h, qkv_w_ref[d]) + qkv_b_ref[d]           # (rows, 3D); q pre-scaled
        pw = proj_w_ref[d]                                   # (D, D)

        attn = jnp.zeros_like(x)
        for hh in range(num_heads):
            c = hh * head_dim
            q = qkv[:, c:c + head_dim]                       # (rows, hd)
            k = qkv[:, D + c:D + c + head_dim]
            v = qkv[:, 2 * D + c:2 * D + c + head_dim]
            s = jax.lax.dot_general(
                q, k, (((1,), (1,)), ((), ())),
                preferred_element_type=jnp.float32)          # (rows, rows)
            s = s + mask
            s = s - jnp.max(s, axis=-1, keepdims=True)
            p = jnp.exp(s)
            p = p * pl.reciprocal(jnp.sum(p, axis=-1, keepdims=True), approx=True)
            o = _dot(p, v)                                   # (rows, hd)
            # fold head output straight into the output projection:
            # sum_h o_h @ proj_w[h*hd:(h+1)*hd, :]  (sublane-aligned weight slice)
            attn = attn + _dot(o, pw[c:c + head_dim, :])

        x = x + attn + proj_b_ref[d]

        # ----- MLP -----
        h2 = _ln(x, ln2_g_ref[d], ln2_b_ref[d])
        h2 = _gelu(_dot(h2, fc1_w_ref[d]) + fc1_b_ref[d])
        h2 = _dot(h2, fc2_w_ref[d]) + fc2_b_ref[d]
        x = x + h2

        tok_ref[...] = x

        # ----- mid-feature taps (mean over patch tokens, via selector matmul) -----
        @pl.when(d == taps[0])
        def _():
            mid0_ref[...] = _dot(pool_ref[...], x)

        @pl.when(d == taps[1])
        def _():
            mid1_ref[...] = _dot(pool_ref[...], x)

        return carry

    jax.lax.fori_loop(0, depth, block_body, 0)

    # ---- final LayerNorm, last mid feature, classification head ----
    xf = _ln(tok_ref[...], norm_g_ref[...], norm_b_ref[...])
    mid2 = _dot(pool_ref[...], xf)                           # (CB, D)
    cls_rows = _dot(cls_sel_ref[...], xf)                    # (CB, D)
    logits = _dot(cls_rows, head_w_ref[...]) + head_b_ref[...]   # (CB, D) padded

    # single lane-dense packed output: [mid0 | mid1 | mid2 | logits_padded]
    out_ref[0] = jnp.concatenate([mid0_ref[...], mid1_ref[...], mid2, logits], axis=-1)


# ----------------------------------------------------------------------------
# parameters (deterministic synthetic init)
# ----------------------------------------------------------------------------
def init_params(key, *, img=16, patch=4, in_chans=3, dim=32, depth=8,
                heads=4, mlp_ratio=4, num_classes=2):
    hp = img // patch
    n_tokens = hp * hp + 1
    mlp = dim * mlp_ratio
    n_keys = 4 + depth * 4
    keys = iter(jax.random.split(key, n_keys))

    def nrm(k, shape, std=0.02):
        return std * jax.random.normal(k, shape, jnp.float32)

    params = {
        # Conv2d(3, dim, patch, patch) stored pre-flattened/transposed: (C*p*p, D)
        "patch_w": nrm(next(keys), (in_chans * patch * patch, dim)),
        "patch_b": jnp.zeros((1, dim), jnp.float32),
        "cls_token": nrm(next(keys), (1, 1, dim)),
        "pos_embed": nrm(next(keys), (1, n_tokens, dim)),
        "norm_g": jnp.ones((1, dim), jnp.float32),
        "norm_b": jnp.zeros((1, dim), jnp.float32),
        "head_w": nrm(next(keys), (dim, num_classes)),
        "head_b": jnp.zeros((1, num_classes), jnp.float32),
        "blocks": [],
    }
    for _ in range(depth):
        params["blocks"].append({
            "ln1_g": jnp.ones((1, dim), jnp.float32),
            "ln1_b": jnp.zeros((1, dim), jnp.float32),
            "qkv_w": nrm(next(keys), (dim, 3 * dim)),
            "qkv_b": jnp.zeros((1, 3 * dim), jnp.float32),
            "proj_w": nrm(next(keys), (dim, dim)),
            "proj_b": jnp.zeros((1, dim), jnp.float32),
            "ln2_g": jnp.ones((1, dim), jnp.float32),
            "ln2_b": jnp.zeros((1, dim), jnp.float32),
            "fc1_w": nrm(next(keys), (dim, mlp)),
            "fc1_b": jnp.zeros((1, mlp), jnp.float32),
            "fc2_w": nrm(next(keys), (mlp, dim)),
            "fc2_b": jnp.zeros((1, dim), jnp.float32),
        })
    return params


def prepare_params(params, *, heads=4, img=16, patch=4, in_chans=3, batch_block=1):
    """One-time transform: stack per-block weights along depth, fold the attention
    scale into q, and precompute all layout constants (padded token base, patch
    scatter matrix, additive attention mask, pool/cls selectors, padded head)."""
    D = params["patch_w"].shape[1]
    depth = len(params["blocks"])
    num_classes = params["head_w"].shape[1]
    assert num_classes <= D, "logit padding assumes num_classes <= dim"
    head_dim = D // heads
    scale = 1.0 / math.sqrt(head_dim)

    hp = img // patch
    n_patch = hp * hp
    n_tokens = n_patch + 1
    nt_pad = ((n_tokens + 7) // 8) * 8          # pad per-batch token block to sublane(8)
    CB = batch_block
    rows = CB * nt_pad

    def stack(name):
        return jnp.stack([blk[name] for blk in params["blocks"]], axis=0)

    qkv_w = stack("qkv_w")                      # (depth, D, 3D)
    qkv_b = stack("qkv_b")                      # (depth, 1, 3D)
    qkv_w = qkv_w.at[:, :, :D].multiply(scale)  # pre-scale q
    qkv_b = qkv_b.at[:, :, :D].multiply(scale)

    # base token tensor: cls+pos at row 0 of each batch block, pos on patch rows,
    # zeros on pad rows
    pos = params["pos_embed"].reshape(n_tokens, D)
    cls = params["cls_token"].reshape(1, D)
    base_one = jnp.zeros((nt_pad, D), jnp.float32)
    base_one = base_one.at[0].set(cls[0] + pos[0])
    base_one = base_one.at[1:n_tokens].set(pos[1:])
    base_tok = jnp.tile(base_one, (CB, 1))      # (rows, D)

    # scatter matrix: patch-embed row (b, p) -> padded token row b*nt_pad + 1 + p
    r_idx = jnp.arange(CB * n_patch)
    dst = (r_idx // n_patch) * nt_pad + 1 + (r_idx % n_patch)
    scatter = jnp.zeros((rows, CB * n_patch), jnp.float32).at[dst, r_idx].set(1.0)

    # additive attention mask: 0 where (same batch element AND key is a valid
    # token), -1e30 otherwise (masks pad tokens and cross-batch attention)
    tok_in_row = jnp.arange(rows) % nt_pad
    batch_of = jnp.arange(rows) // nt_pad
    valid_col = tok_in_row < n_tokens
    same = batch_of[:, None] == batch_of[None, :]
    mask = jnp.where(same & valid_col[None, :], 0.0, -1e30).astype(jnp.float32)

    # selector matmuls: patch-token mean pool and cls-row extraction
    bsel = batch_of[None, :] == jnp.arange(CB)[:, None]          # (CB, rows)
    is_patch = (tok_in_row >= 1) & (tok_in_row < n_tokens)
    pool_sel = jnp.where(bsel & is_patch[None, :], 1.0 / n_patch, 0.0).astype(jnp.float32)
    cls_sel = jnp.where(bsel & (tok_in_row[None, :] == 0), 1.0, 0.0).astype(jnp.float32)

    # head padded to D output lanes so the packed output is exactly 4*D lanes
    head_w = jnp.zeros((D, D), jnp.float32).at[:, :num_classes].set(params["head_w"])
    head_b = jnp.zeros((1, D), jnp.float32).at[:, :num_classes].set(params["head_b"])

    return {
        "patch_w": params["patch_w"], "patch_b": params["patch_b"],
        "base_tok": base_tok, "scatter": scatter, "mask": mask,
        "pool_sel": pool_sel, "cls_sel": cls_sel,
        "ln1_g": stack("ln1_g"), "ln1_b": stack("ln1_b"),
        "qkv_w": qkv_w, "qkv_b": qkv_b,
        "proj_w": stack("proj_w"), "proj_b": stack("proj_b"),
        "ln2_g": stack("ln2_g"), "ln2_b": stack("ln2_b"),
        "fc1_w": stack("fc1_w"), "fc1_b": stack("fc1_b"),
        "fc2_w": stack("fc2_w"), "fc2_b": stack("fc2_b"),
        "norm_g": params["norm_g"], "norm_b": params["norm_b"],
        "head_w": head_w, "head_b": head_b,
    }


# ----------------------------------------------------------------------------
# forward pass wrapper (one pallas_call, grid over batch chunks)
# ----------------------------------------------------------------------------
def distillable_vit_forward(x, prep, *, patch=4, heads=4, taps=(3, 7), num_classes=2):
    assert len(taps) == 2 and taps[0] != taps[1]
    B, C, H, W = x.shape
    hp, wp = H // patch, W // patch
    Np = hp * wp
    Kin = C * patch * patch
    D = prep["patch_w"].shape[1]
    depth = prep["qkv_w"].shape[0]
    assert all(0 <= t < depth for t in taps)
    head_dim = D // heads
    CB = prep["pool_sel"].shape[0]
    rows = prep["base_tok"].shape[0]
    assert B % CB == 0, "batch must be divisible by the kernel batch chunk"
    n_chunks = B // CB
    out_lanes = 4 * D

    # unfold NCHW into patch rows (c, dy, dx order), matching Conv2d weight
    # flattening; grouped by batch chunk for the grid.
    patches = x.reshape(B, C, hp, patch, wp, patch).transpose(0, 2, 4, 1, 3, 5)
    patches = patches.reshape(n_chunks, CB * Np, Kin)

    kernel = functools.partial(
        fused_vit_kernel, num_heads=heads, head_dim=head_dim, depth=depth, taps=taps,
    )

    def const_spec(a):
        nd = a.ndim
        return pl.BlockSpec(a.shape, lambda i, _nd=nd: (0,) * _nd)

    const_inputs = [
        prep["scatter"], prep["base_tok"], prep["mask"],
        prep["pool_sel"], prep["cls_sel"],
        prep["patch_w"], prep["patch_b"],
        prep["ln1_g"], prep["ln1_b"], prep["qkv_w"], prep["qkv_b"],
        prep["proj_w"], prep["proj_b"], prep["ln2_g"], prep["ln2_b"],
        prep["fc1_w"], prep["fc1_b"], prep["fc2_w"], prep["fc2_b"],
        prep["norm_g"], prep["norm_b"], prep["head_w"], prep["head_b"],
    ]
    in_specs = [pl.BlockSpec((1, CB * Np, Kin), lambda i: (i, 0, 0))] + \
               [const_spec(a) for a in const_inputs]

    packed = pl.pallas_call(
        kernel,
        grid=(n_chunks,),
        in_specs=in_specs,
        out_specs=pl.BlockSpec((1, CB, out_lanes), lambda i: (i, 0, 0)),
        out_shape=jax.ShapeDtypeStruct((n_chunks, CB, out_lanes), jnp.float32),
        scratch_shapes=[
            pltpu.VMEM((rows, D), jnp.float32),   # resident token buffer
            pltpu.VMEM((CB, D), jnp.float32),     # mid feature (tap 0)
            pltpu.VMEM((CB, D), jnp.float32),     # mid feature (tap 1)
        ],
        compiler_params=pltpu.CompilerParams(
            dimension_semantics=("parallel",)),    # v7x: 2 TCs split the batch chunks
    )(patches, *const_inputs)

    packed = packed.reshape(B, out_lanes)
    mid0 = packed[:, 0:D]
    mid1 = packed[:, D:2 * D]
    mid2 = packed[:, 2 * D:3 * D]
    logits = packed[:, 3 * D:3 * D + num_classes]
    return logits, [mid0, mid1, mid2]


if __name__ == "__main__":
    key = jax.random.PRNGKey(0)
    pkey, xkey = jax.random.split(key)
    params = init_params(pkey)
    # batch_block=1 -> grid=(B,), each grid step handles one image (parallel on v7x).
    # For v6e/v7x throughput runs, raise B per call and batch_block accordingly.
    prep = prepare_params(params, heads=4, img=16, patch=4, in_chans=3, batch_block=1)
    x = jax.random.normal(xkey, (2, 3, 16, 16), jnp.float32)

    fwd = jax.jit(distillable_vit_forward)
    logits, mid_feats = fwd(x, prep)
    jax.block_until_ready(logits)
    for m in mid_feats:
        jax.block_until_ready(m)

    assert logits.shape == (2, 2), logits.shape
    assert len(mid_feats) == 3 and all(m.shape == (2, 32) for m in mid_feats)
    assert bool(jnp.all(jnp.isfinite(logits)))
    assert all(bool(jnp.all(jnp.isfinite(m))) for m in mid_feats)
    print("KERNEL_OK")
</pallas_src>

<mosaic_0001>
module attributes {stable_mosaic.version = 11 : i64} {
  func.func @fused_vit_kernel(%arg0: i32, %arg1: memref<1x16x48xf32, #tpu.memory_space<vmem>>, %arg2: memref<24x16xf32, #tpu.memory_space<vmem>>, %arg3: memref<24x32xf32, #tpu.memory_space<vmem>>, %arg4: memref<24x24xf32, #tpu.memory_space<vmem>>, %arg5: memref<1x24xf32, #tpu.memory_space<vmem>>, %arg6: memref<1x24xf32, #tpu.memory_space<vmem>>, %arg7: memref<48x32xf32, #tpu.memory_space<vmem>>, %arg8: memref<1x32xf32, #tpu.memory_space<vmem>>, %arg9: memref<8x1x32xf32, #tpu.memory_space<vmem>>, %arg10: memref<8x1x32xf32, #tpu.memory_space<vmem>>, %arg11: memref<8x32x96xf32, #tpu.memory_space<vmem>>, %arg12: memref<8x1x96xf32, #tpu.memory_space<vmem>>, %arg13: memref<8x32x32xf32, #tpu.memory_space<vmem>>, %arg14: memref<8x1x32xf32, #tpu.memory_space<vmem>>, %arg15: memref<8x1x32xf32, #tpu.memory_space<vmem>>, %arg16: memref<8x1x32xf32, #tpu.memory_space<vmem>>, %arg17: memref<8x32x128xf32, #tpu.memory_space<vmem>>, %arg18: memref<8x1x128xf32, #tpu.memory_space<vmem>>, %arg19: memref<8x128x32xf32, #tpu.memory_space<vmem>>, %arg20: memref<8x1x32xf32, #tpu.memory_space<vmem>>, %arg21: memref<1x32xf32, #tpu.memory_space<vmem>>, %arg22: memref<1x32xf32, #tpu.memory_space<vmem>>, %arg23: memref<32x32xf32, #tpu.memory_space<vmem>>, %arg24: memref<1x32xf32, #tpu.memory_space<vmem>>, %arg25: memref<1x1x128xf32, #tpu.memory_space<vmem>>, %arg26: memref<24x32xf32, #tpu.memory_space<vmem>>, %arg27: memref<1x32xf32, #tpu.memory_space<vmem>>, %arg28: memref<1x32xf32, #tpu.memory_space<vmem>>) attributes {dimension_semantics = [#tpu.dimension_semantics<parallel>], iteration_bounds = array<i64: 2>, scalar_prefetch = 0 : i64, scratch_operands = 3 : i64, tpu.core_type = #tpu.core_type<tc>, window_params = [{transform_indices = @transform_0, window_bounds = array<i64: 1, 16, 48>}, {pipeline_mode = #tpu.pipeline_mode<synchronous>, transform_indices = @transform_1, window_bounds = array<i64: 24, 16>}, {pipeline_mode = #tpu.pipeline_mode<synchronous>, transform_indices = @transform_2, window_bounds = array<i64: 24, 32>}, {pipeline_mode = #tpu.pipeline_mode<synchronous>, transform_indices = @transform_3, window_bounds = array<i64: 24, 24>}, {pipeline_mode = #tpu.pipeline_mode<synchronous>, transform_indices = @transform_4, window_bounds = array<i64: 1, 24>}, {pipeline_mode = #tpu.pipeline_mode<synchronous>, transform_indices = @transform_5, window_bounds = array<i64: 1, 24>}, {pipeline_mode = #tpu.pipeline_mode<synchronous>, transform_indices = @transform_6, window_bounds = array<i64: 48, 32>}, {pipeline_mode = #tpu.pipeline_mode<synchronous>, transform_indices = @transform_7, window_bounds = array<i64: 1, 32>}, {pipeline_mode = #tpu.pipeline_mode<synchronous>, transform_indices = @transform_8, window_bounds = array<i64: 8, 1, 32>}, {pipeline_mode = #tpu.pipeline_mode<synchronous>, transform_indices = @transform_9, window_bounds = array<i64: 8, 1, 32>}, {pipeline_mode = #tpu.pipeline_mode<synchronous>, transform_indices = @transform_10, window_bounds = array<i64: 8, 32, 96>}, {pipeline_mode = #tpu.pipeline_mode<synchronous>, transform_indices = @transform_11, window_bounds = array<i64: 8, 1, 96>}, {pipeline_mode = #tpu.pipeline_mode<synchronous>, transform_indices = @transform_12, window_bounds = array<i64: 8, 32, 32>}, {pipeline_mode = #tpu.pipeline_mode<synchronous>, transform_indices = @transform_13, window_bounds = array<i64: 8, 1, 32>}, {pipeline_mode = #tpu.pipeline_mode<synchronous>, transform_indices = @transform_14, window_bounds = array<i64: 8, 1, 32>}, {pipeline_mode = #tpu.pipeline_mode<synchronous>, transform_indices = @transform_15, window_bounds = array<i64: 8, 1, 32>}, {pipeline_mode = #tpu.pipeline_mode<synchronous>, transform_indices = @transform_16, window_bounds = array<i64: 8, 32, 128>}, {pipeline_mode = #tpu.pipeline_mode<synchronous>, transform_indices = @transform_17, window_bounds = array<i64: 8, 1, 128>}, {pipeline_mode = #tpu.pipeline_mode<synchronous>, transform_indices = @transform_18, window_bounds = array<i64: 8, 128, 32>}, {pipeline_mode = #tpu.pipeline_mode<synchronous>, transform_indices = @transform_19, window_bounds = array<i64: 8, 1, 32>}, {pipeline_mode = #tpu.pipeline_mode<synchronous>, transform_indices = @transform_20, window_bounds = array<i64: 1, 32>}, {pipeline_mode = #tpu.pipeline_mode<synchronous>, transform_indices = @transform_21, window_bounds = array<i64: 1, 32>}, {pipeline_mode = #tpu.pipeline_mode<synchronous>, transform_indices = @transform_22, window_bounds = array<i64: 32, 32>}, {pipeline_mode = #tpu.pipeline_mode<synchronous>, transform_indices = @transform_23, window_bounds = array<i64: 1, 32>}, {transform_indices = @transform_24, window_bounds = array<i64: 1, 1, 128>}]} {
    %c0 = arith.constant 0 : index
    %c0_0 = arith.constant 0 : index
    %c0_1 = arith.constant 0 : index
    %0 = vector.load %arg1[%c0, %c0_0, %c0_1] : memref<1x16x48xf32, #tpu.memory_space<vmem>>, vector<1x16x48xf32>
    %1 = vector.shape_cast %0 : vector<1x16x48xf32> to vector<16x48xf32>
    %c0_2 = arith.constant 0 : index
    %c0_3 = arith.constant 0 : index
    %2 = vector.load %arg7[%c0_2, %c0_3] : memref<48x32xf32, #tpu.memory_space<vmem>>, vector<48x32xf32>
    %cst = arith.constant dense<0.000000e+00> : vector<16x32xf32>
    %3 = tpu.matmul %1, %2, %cst {dimension_numbers = #tpu.dot_dimension_numbers<[1], [0], [0], [1], [0, 0, 1, 1], [], []>} : vector<16x48xf32>, vector<48x32xf32>, vector<16x32xf32> -> vector<16x32xf32>
    %c0_4 = arith.constant 0 : index
    %c0_5 = arith.constant 0 : index
    %4 = vector.load %arg8[%c0_4, %c0_5] : memref<1x32xf32, #tpu.memory_space<vmem>>, vector<1x32xf32>
    %5 = vector.broadcast %4 : vector<1x32xf32> to vector<16x32xf32>
    %6 = arith.addf %3, %5 : vector<16x32xf32>
    %c0_6 = arith.constant 0 : index
    %c0_7 = arith.constant 0 : index
    %7 = vector.load %arg2[%c0_6, %c0_7] : memref<24x16xf32, #tpu.memory_space<vmem>>, vector<24x16xf32>
    %cst_8 = arith.constant dense<0.000000e+00> : vector<24x32xf32>
    %8 = tpu.matmul %7, %6, %cst_8 {dimension_numbers = #tpu.dot_dimension_numbers<[1], [0], [0], [1], [0, 0, 1, 1], [], []>} : vector<24x16xf32>, vector<16x32xf32>, vector<24x32xf32> -> vector<24x32xf32>
    %c0_9 = arith.constant 0 : index
    %c0_10 = arith.constant 0 : index
    %9 = vector.load %arg3[%c0_9, %c0_10] : memref<24x32xf32, #tpu.memory_space<vmem>>, vector<24x32xf32>
    %10 = arith.addf %8, %9 : vector<24x32xf32>
    %c0_11 = arith.constant 0 : index
    %c0_12 = arith.constant 0 : index
    %11 = vector.load %arg26[%c0_11, %c0_12] : memref<24x32xf32, #tpu.memory_space<vmem>>, vector<24x32xf32>
    tpu.vector_store %arg26[%c0_11, %c0_12], %10 {strides = array<i32>} : memref<24x32xf32, #tpu.memory_space<vmem>>, vector<24x32xf32>,
    %c0_13 = arith.constant 0 : index
    %c0_14 = arith.constant 0 : index
    %12 = vector.load %arg4[%c0_13, %c0_14] : memref<24x24xf32, #tpu.memory_space<vmem>>, vector<24x24xf32>
    %c0_i32 = arith.constant 0 : i32
    %c8_i32 = arith.constant 8 : i32
    %13 = arith.addi %c0_i32, %c8_i32 : i32
    %c1_i32 = arith.constant 1 : i32
    scf.for %arg29 = %c0_i32 to %13 step %c1_i32  : i32 {
      %c0_45 = arith.constant 0 : index
      %c0_46 = arith.constant 0 : index
      %53 = vector.load %arg26[%c0_45, %c0_46] : memref<24x32xf32, #tpu.memory_space<vmem>>, vector<24x32xf32>
      %54 = arith.index_cast %arg29 : i32 to index
      %c0_47 = arith.constant 0 : index
      %c0_48 = arith.constant 0 : index
      %55 = vector.load %arg9[%54, %c0_47, %c0_48] : memref<8x1x32xf32, #tpu.memory_space<vmem>>, vector<1x1x32xf32>
      %56 = vector.shape_cast %55 : vector<1x1x32xf32> to vector<1x32xf32>
      %57 = arith.index_cast %arg29 : i32 to index
      %c0_49 = arith.constant 0 : index
      %c0_50 = arith.constant 0 : index
      %58 = vector.load %arg10[%57, %c0_49, %c0_50] : memref<8x1x32xf32, #tpu.memory_space<vmem>>, vector<1x1x32xf32>
      %59 = vector.shape_cast %58 : vector<1x1x32xf32> to vector<1x32xf32>
      %cst_51 = arith.constant dense<0.000000e+00> : vector<24xf32>
      %60 = vector.multi_reduction <add>, %53, %cst_51 [1] : vector<24x32xf32> to vector<24xf32>
      %61 = vector.shape_cast %60 : vector<24xf32> to vector<24x1xf32>
      %cst_52 = arith.constant 3.200000e+01 : f32
      %62 = vector.broadcast %cst_52 : f32 to vector<24x1xf32>
      %63 = arith.divf %61, %62 : vector<24x1xf32>
      %64 = vector.broadcast %63 : vector<24x1xf32> to vector<24x32xf32>
      %65 = arith.subf %53, %64 : vector<24x32xf32>
      %66 = arith.mulf %65, %65 : vector<24x32xf32>
      %cst_53 = arith.constant dense<0.000000e+00> : vector<24xf32>
      %67 = vector.multi_reduction <add>, %66, %cst_53 [1] : vector<24x32xf32> to vector<24xf32>
      %68 = vector.shape_cast %67 : vector<24xf32> to vector<24x1xf32>
      %cst_54 = arith.constant 3.200000e+01 : f32
      %69 = vector.broadcast %cst_54 : f32 to vector<24x1xf32>
      %70 = arith.divf %68, %69 : vector<24x1xf32>
      %71 = vector.broadcast %63 : vector<24x1xf32> to vector<24x32xf32>
      %72 = arith.subf %53, %71 : vector<24x32xf32>
      %cst_55 = arith.constant 9.99999997E-7 : f32
      %73 = vector.broadcast %cst_55 : f32 to vector<24x1xf32>
      %74 = arith.addf %70, %73 : vector<24x1xf32>
      %75 = math.rsqrt %74 : vector<24x1xf32>
      %76 = vector.broadcast %75 : vector<24x1xf32> to vector<24x32xf32>
      %77 = arith.mulf %72, %76 : vector<24x32xf32>
      %78 = vector.broadcast %56 : vector<1x32xf32> to vector<24x32xf32>
      %79 = arith.mulf %77, %78 : vector<24x32xf32>
      %80 = vector.broadcast %59 : vector<1x32xf32> to vector<24x32xf32>
      %81 = arith.addf %79, %80 : vector<24x32xf32>
      %82 = arith.index_cast %arg29 : i32 to index
      %c0_56 = arith.constant 0 : index
      %c0_57 = arith.constant 0 : index
      %83 = vector.load %arg11[%82, %c0_56, %c0_57] : memref<8x32x96xf32, #tpu.memory_space<vmem>>, vector<1x32x96xf32>
      %84 = vector.shape_cast %83 : vector<1x32x96xf32> to vector<32x96xf32>
      %cst_58 = arith.constant dense<0.000000e+00> : vector<24x96xf32>
      %85 = tpu.matmul %81, %84, %cst_58 {dimension_numbers = #tpu.dot_dimension_numbers<[1], [0], [0], [1], [0, 0, 1, 1], [], []>} : vector<24x32xf32>, vector<32x96xf32>, vector<24x96xf32> -> vector<24x96xf32>
      %86 = arith.index_cast %arg29 : i32 to index
      %c0_59 = arith.constant 0 : index
      %c0_60 = arith.constant 0 : index
      %87 = vector.load %arg12[%86, %c0_59, %c0_60] : memref<8x1x96xf32, #tpu.memory_space<vmem>>, vector<1x1x96xf32>
      %88 = vector.shape_cast %87 : vector<1x1x96xf32> to vector<1x96xf32>
      %89 = vector.broadcast %88 : vector<1x96xf32> to vector<24x96xf32>
      %90 = arith.addf %85, %89 : vector<24x96xf32>
      %91 = arith.index_cast %arg29 : i32 to index
      %c0_61 = arith.constant 0 : index
      %c0_62 = arith.constant 0 : index
      %92 = vector.load %arg13[%91, %c0_61, %c0_62] : memref<8x32x32xf32, #tpu.memory_space<vmem>>, vector<1x32x32xf32>
      %93 = vector.shape_cast %92 : vector<1x32x32xf32> to vector<32x32xf32>
      %cst_63 = arith.constant 0.000000e+00 : f32
      %94 = vector.broadcast %cst_63 : f32 to vector<24x32xf32>
      %95 = vector.extract_strided_slice %90 {offsets = [0, 0], sizes = [24, 8], strides = [1, 1]} : vector<24x96xf32> to vector<24x8xf32>
      %96 = vector.extract_strided_slice %90 {offsets = [0, 32], sizes = [24, 8], strides = [1, 1]} : vector<24x96xf32> to vector<24x8xf32>
      %97 = vector.extract_strided_slice %90 {offsets = [0, 64], sizes = [24, 8], strides = [1, 1]} : vector<24x96xf32> to vector<24x8xf32>
      %cst_64 = arith.constant dense<0.000000e+00> : vector<24x24xf32>
      %98 = tpu.matmul %95, %96, %cst_64 {dimension_numbers = #tpu.dot_dimension_numbers<[1], [1], [0], [0], [0, 0, 1, 0], [], []>} : vector<24x8xf32>, vector<24x8xf32>, vector<24x24xf32> -> vector<24x24xf32>
      %99 = arith.addf %98, %12 : vector<24x24xf32>
      %cst_65 = arith.constant dense<0xFF800000> : vector<24xf32>
      %100 = vector.multi_reduction <maximumf>, %99, %cst_65 [1] : vector<24x24xf32> to vector<24xf32>
      %101 = vector.shape_cast %100 : vector<24xf32> to vector<24x1xf32>
      %102 = vector.broadcast %101 : vector<24x1xf32> to vector<24x24xf32>
      %103 = arith.subf %99, %102 : vector<24x24xf32>
      %104 = math.exp %103 : vector<24x24xf32>
      %cst_66 = arith.constant dense<0.000000e+00> : vector<24xf32>
      %105 = vector.multi_reduction <add>, %104, %cst_66 [1] : vector<24x24xf32> to vector<24xf32>
      %106 = vector.shape_cast %105 : vector<24xf32> to vector<24x1xf32>
      %107 = tpu.reciprocal %106 {approx = true} : vector<24x1xf32> -> vector<24x1xf32>
      %108 = vector.broadcast %107 : vector<24x1xf32> to vector<24x24xf32>
      %109 = arith.mulf %104, %108 : vector<24x24xf32>
      %cst_67 = arith.constant dense<0.000000e+00> : vector<24x8xf32>
      %110 = tpu.matmul %109, %97, %cst_67 {dimension_numbers = #tpu.dot_dimension_numbers<[1], [0], [0], [1], [0, 0, 1, 1], [], []>} : vector<24x24xf32>, vector<24x8xf32>, vector<24x8xf32> -> vector<24x8xf32>
      %111 = vector.extract_strided_slice %93 {offsets = [0, 0], sizes = [8, 32], strides = [1, 1]} : vector<32x32xf32> to vector<8x32xf32>
      %cst_68 = arith.constant dense<0.000000e+00> : vector<24x32xf32>
      %112 = tpu.matmul %110, %111, %cst_68 {dimension_numbers = #tpu.dot_dimension_numbers<[1], [0], [0], [1], [0, 0, 1, 1], [], []>} : vector<24x8xf32>, vector<8x32xf32>, vector<24x32xf32> -> vector<24x32xf32>
      %113 = arith.addf %94, %112 : vector<24x32xf32>
      %114 = vector.extract_strided_slice %90 {offsets = [0, 8], sizes = [24, 8], strides = [1, 1]} : vector<24x96xf32> to vector<24x8xf32>
      %115 = vector.extract_strided_slice %90 {offsets = [0, 40], sizes = [24, 8], strides = [1, 1]} : vector<24x96xf32> to vector<24x8xf32>
      %116 = vector.extract_strided_slice %90 {offsets = [0, 72], sizes = [24, 8], strides = [1, 1]} : vector<24x96xf32> to vector<24x8xf32>
      %cst_69 = arith.constant dense<0.000000e+00> : vector<24x24xf32>
      %117 = tpu.matmul %114, %115, %cst_69 {dimension_numbers = #tpu.dot_dimension_numbers<[1], [1], [0], [0], [0, 0, 1, 0], [], []>} : vector<24x8xf32>, vector<24x8xf32>, vector<24x24xf32> -> vector<24x24xf32>
      %118 = arith.addf %117, %12 : vector<24x24xf32>
      %cst_70 = arith.constant dense<0xFF800000> : vector<24xf32>
      %119 = vector.multi_reduction <maximumf>, %118, %cst_70 [1] : vector<24x24xf32> to vector<24xf32>
      %120 = vector.shape_cast %119 : vector<24xf32> to vector<24x1xf32>
      %121 = vector.broadcast %120 : vector<24x1xf32> to vector<24x24xf32>
      %122 = arith.subf %118, %121 : vector<24x24xf32>
      %123 = math.exp %122 : vector<24x24xf32>
      %cst_71 = arith.constant dense<0.000000e+00> : vector<24xf32>
      %124 = vector.multi_reduction <add>, %123, %cst_71 [1] : vector<24x24xf32> to vector<24xf32>
      %125 = vector.shape_cast %124 : vector<24xf32> to vector<24x1xf32>
      %126 = tpu.reciprocal %125 {approx = true} : vector<24x1xf32> -> vector<24x1xf32>
      %127 = vector.broadcast %126 : vector<24x1xf32> to vector<24x24xf32>
      %128 = arith.mulf %123, %127 : vector<24x24xf32>
      %cst_72 = arith.constant dense<0.000000e+00> : vector<24x8xf32>
      %129 = tpu.matmul %128, %116, %cst_72 {dimension_numbers = #tpu.dot_dimension_numbers<[1], [0], [0], [1], [0, 0, 1, 1], [], []>} : vector<24x24xf32>, vector<24x8xf32>, vector<24x8xf32> -> vector<24x8xf32>
      %130 = vector.extract_strided_slice %93 {offsets = [8, 0], sizes = [8, 32], strides = [1, 1]} : vector<32x32xf32> to vector<8x32xf32>
      %cst_73 = arith.constant dense<0.000000e+00> : vector<24x32xf32>
      %131 = tpu.matmul %129, %130, %cst_73 {dimension_numbers = #tpu.dot_dimension_numbers<[1], [0], [0], [1], [0, 0, 1, 1], [], []>} : vector<24x8xf32>, vector<8x32xf32>, vector<24x32xf32> -> vector<24x32xf32>
      %132 = arith.addf %113, %131 : vector<24x32xf32>
      %133 = vector.extract_strided_slice %90 {offsets = [0, 16], sizes = [24, 8], strides = [1, 1]} : vector<24x96xf32> to vector<24x8xf32>
      %134 = vector.extract_strided_slice %90 {offsets = [0, 48], sizes = [24, 8], strides = [1, 1]} : vector<24x96xf32> to vector<24x8xf32>
      %135 = vector.extract_strided_slice %90 {offsets = [0, 80], sizes = [24, 8], strides = [1, 1]} : vector<24x96xf32> to vector<24x8xf32>
      %cst_74 = arith.constant dense<0.000000e+00> : vector<24x24xf32>
      %136 = tpu.matmul %133, %134, %cst_74 {dimension_numbers = #tpu.dot_dimension_numbers<[1], [1], [0], [0], [0, 0, 1, 0], [], []>} : vector<24x8xf32>, vector<24x8xf32>, vector<24x24xf32> -> vector<24x24xf32>
      %137 = arith.addf %136, %12 : vector<24x24xf32>
      %cst_75 = arith.constant dense<0xFF800000> : vector<24xf32>
      %138 = vector.multi_reduction <maximumf>, %137, %cst_75 [1] : vector<24x24xf32> to vector<24xf32>
      %139 = vector.shape_cast %138 : vector<24xf32> to vector<24x1xf32>
      %140 = vector.broadcast %139 : vector<24x1xf32> to vector<24x24xf32>
      %141 = arith.subf %137, %140 : vector<24x24xf32>
      %142 = math.exp %141 : vector<24x24xf32>
      %cst_76 = arith.constant dense<0.000000e+00> : vector<24xf32>
      %143 = vector.multi_reduction <add>, %142, %cst_76 [1] : vector<24x24xf32> to vector<24xf32>
      %144 = vector.shape_cast %143 : vector<24xf32> to vector<24x1xf32>
      %145 = tpu.reciprocal %144 {approx = true} : vector<24x1xf32> -> vector<24x1xf32>
      %146 = vector.broadcast %145 : vector<24x1xf32> to vector<24x24xf32>
      %147 = arith.mulf %142, %146 : vector<24x24xf32>
      %cst_77 = arith.constant dense<0.000000e+00> : vector<24x8xf32>
      %148 = tpu.matmul %147, %135, %cst_77 {dimension_numbers = #tpu.dot_dimension_numbers<[1], [0], [0], [1], [0, 0, 1, 1], [], []>} : vector<24x24xf32>, vector<24x8xf32>, vector<24x8xf32> -> vector<24x8xf32>
      %149 = vector.extract_strided_slice %93 {offsets = [16, 0], sizes = [8, 32], strides = [1, 1]} : vector<32x32xf32> to vector<8x32xf32>
      %cst_78 = arith.constant dense<0.000000e+00> : vector<24x32xf32>
      %150 = tpu.matmul %148, %149, %cst_78 {dimension_numbers = #tpu.dot_dimension_numbers<[1], [0], [0], [1], [0, 0, 1, 1], [], []>} : vector<24x8xf32>, vector<8x32xf32>, vector<24x32xf32> -> vector<24x32xf32>
      %151 = arith.addf %132, %150 : vector<24x32xf32>
      %152 = vector.extract_strided_slice %90 {offsets = [0, 24], sizes = [24, 8], strides = [1, 1]} : vector<24x96xf32> to vector<24x8xf32>
      %153 = vector.extract_strided_slice %90 {offsets = [0, 56], sizes = [24, 8], strides = [1, 1]} : vector<24x96xf32> to vector<24x8xf32>
      %154 = vector.extract_strided_slice %90 {offsets = [0, 88], sizes = [24, 8], strides = [1, 1]} : vector<24x96xf32> to vector<24x8xf32>
      %cst_79 = arith.constant dense<0.000000e+00> : vector<24x24xf32>
      %155 = tpu.matmul %152, %153, %cst_79 {dimension_numbers = #tpu.dot_dimension_numbers<[1], [1], [0], [0], [0, 0, 1, 0], [], []>} : vector<24x8xf32>, vector<24x8xf32>, vector<24x24xf32> -> vector<24x24xf32>
      %156 = arith.addf %155, %12 : vector<24x24xf32>
      %cst_80 = arith.constant dense<0xFF800000> : vector<24xf32>
      %157 = vector.multi_reduction <maximumf>, %156, %cst_80 [1] : vector<24x24xf32> to vector<24xf32>
      %158 = vector.shape_cast %157 : vector<24xf32> to vector<24x1xf32>
      %159 = vector.broadcast %158 : vector<24x1xf32> to vector<24x24xf32>
      %160 = arith.subf %156, %159 : vector<24x24xf32>
      %161 = math.exp %160 : vector<24x24xf32>
      %cst_81 = arith.constant dense<0.000000e+00> : vector<24xf32>
      %162 = vector.multi_reduction <add>, %161, %cst_81 [1] : vector<24x24xf32> to vector<24xf32>
      %163 = vector.shape_cast %162 : vector<24xf32> to vector<24x1xf32>
      %164 = tpu.reciprocal %163 {approx = true} : vector<24x1xf32> -> vector<24x1xf32>
      %165 = vector.broadcast %164 : vector<24x1xf32> to vector<24x24xf32>
      %166 = arith.mulf %161, %165 : vector<24x24xf32>
      %cst_82 = arith.constant dense<0.000000e+00> : vector<24x8xf32>
      %167 = tpu.matmul %166, %154, %cst_82 {dimension_numbers = #tpu.dot_dimension_numbers<[1], [0], [0], [1], [0, 0, 1, 1], [], []>} : vector<24x24xf32>, vector<24x8xf32>, vector<24x8xf32> -> vector<24x8xf32>
      %168 = vector.extract_strided_slice %93 {offsets = [24, 0], sizes = [8, 32], strides = [1, 1]} : vector<32x32xf32> to vector<8x32xf32>
      %cst_83 = arith.constant dense<0.000000e+00> : vector<24x32xf32>
      %169 = tpu.matmul %167, %168, %cst_83 {dimension_numbers = #tpu.dot_dimension_numbers<[1], [0], [0], [1], [0, 0, 1, 1], [], []>} : vector<24x8xf32>, vector<8x32xf32>, vector<24x32xf32> -> vector<24x32xf32>
      %170 = arith.addf %151, %169 : vector<24x32xf32>
      %171 = arith.addf %53, %170 : vector<24x32xf32>
      %172 = arith.index_cast %arg29 : i32 to index
      %c0_84 = arith.constant 0 : index
      %c0_85 = arith.constant 0 : index
      %173 = vector.load %arg14[%172, %c0_84, %c0_85] : memref<8x1x32xf32, #tpu.memory_space<vmem>>, vector<1x1x32xf32>
      %174 = vector.shape_cast %173 : vector<1x1x32xf32> to vector<1x32xf32>
      %175 = vector.broadcast %174 : vector<1x32xf32> to vector<24x32xf32>
      %176 = arith.addf %171, %175 : vector<24x32xf32>
      %177 = arith.index_cast %arg29 : i32 to index
      %c0_86 = arith.constant 0 : index
      %c0_87 = arith.constant 0 : index
      %178 = vector.load %arg15[%177, %c0_86, %c0_87] : memref<8x1x32xf32, #tpu.memory_space<vmem>>, vector<1x1x32xf32>
      %179 = vector.shape_cast %178 : vector<1x1x32xf32> to vector<1x32xf32>
      %180 = arith.index_cast %arg29 : i32 to index
      %c0_88 = arith.constant 0 : index
      %c0_89 = arith.constant 0 : index
      %181 = vector.load %arg16[%180, %c0_88, %c0_89] : memref<8x1x32xf32, #tpu.memory_space<vmem>>, vector<1x1x32xf32>
      %182 = vector.shape_cast %181 : vector<1x1x32xf32> to vector<1x32xf32>
      %cst_90 = arith.constant dense<0.000000e+00> : vector<24xf32>
      %183 = vector.multi_reduction <add>, %176, %cst_90 [1] : vector<24x32xf32> to vector<24xf32>
      %184 = vector.shape_cast %183 : vector<24xf32> to vector<24x1xf32>
      %cst_91 = arith.constant 3.200000e+01 : f32
      %185 = vector.broadcast %cst_91 : f32 to vector<24x1xf32>
      %186 = arith.divf %184, %185 : vector<24x1xf32>
      %187 = vector.broadcast %186 : vector<24x1xf32> to vector<24x32xf32>
      %188 = arith.subf %176, %187 : vector<24x32xf32>
      %189 = arith.mulf %188, %188 : vector<24x32xf32>
      %cst_92 = arith.constant dense<0.000000e+00> : vector<24xf32>
      %190 = vector.multi_reduction <add>, %189, %cst_92 [1] : vector<24x32xf32> to vector<24xf32>
      %191 = vector.shape_cast %190 : vector<24xf32> to vector<24x1xf32>
      %cst_93 = arith.constant 3.200000e+01 : f32
      %192 = vector.broadcast %cst_93 : f32 to vector<24x1xf32>
      %193 = arith.divf %191, %192 : vector<24x1xf32>
      %194 = vector.broadcast %186 : vector<24x1xf32> to vector<24x32xf32>
      %195 = arith.subf %176, %194 : vector<24x32xf32>
      %cst_94 = arith.constant 9.99999997E-7 : f32
      %196 = vector.broadcast %cst_94 : f32 to vector<24x1xf32>
      %197 = arith.addf %193, %196 : vector<24x1xf32>
      %198 = math.rsqrt %197 : vector<24x1xf32>
      %199 = vector.broadcast %198 : vector<24x1xf32> to vector<24x32xf32>
      %200 = arith.mulf %195, %199 : vector<24x32xf32>
      %201 = vector.broadcast %179 : vector<1x32xf32> to vector<24x32xf32>
      %202 = arith.mulf %200, %201 : vector<24x32xf32>
      %203 = vector.broadcast %182 : vector<1x32xf32> to vector<24x32xf32>
      %204 = arith.addf %202, %203 : vector<24x32xf32>
      %205 = arith.index_cast %arg29 : i32 to index
      %c0_95 = arith.constant 0 : index
      %c0_96 = arith.constant 0 : index
      %206 = vector.load %arg17[%205, %c0_95, %c0_96] : memref<8x32x128xf32, #tpu.memory_space<vmem>>, vector<1x32x128xf32>
      %207 = vector.shape_cast %206 : vector<1x32x128xf32> to vector<32x128xf32>
      %cst_97 = arith.constant dense<0.000000e+00> : vector<24x128xf32>
      %208 = tpu.matmul %204, %207, %cst_97 {dimension_numbers = #tpu.dot_dimension_numbers<[1], [0], [0], [1], [0, 0, 1, 1], [], []>} : vector<24x32xf32>, vector<32x128xf32>, vector<24x128xf32> -> vector<24x128xf32>
      %209 = arith.index_cast %arg29 : i32 to index
      %c0_98 = arith.constant 0 : index
      %c0_99 = arith.constant 0 : index
      %210 = vector.load %arg18[%209, %c0_98, %c0_99] : memref<8x1x128xf32, #tpu.memory_space<vmem>>, vector<1x1x128xf32>
      %211 = vector.shape_cast %210 : vector<1x1x128xf32> to vector<1x128xf32>
      %212 = vector.broadcast %211 : vector<1x128xf32> to vector<24x128xf32>
      %213 = arith.addf %208, %212 : vector<24x128xf32>
      %cst_100 = arith.constant 5.000000e-01 : f32
      %214 = vector.broadcast %cst_100 : f32 to vector<24x128xf32>
      %215 = arith.mulf %214, %213 : vector<24x128xf32>
      %cst_101 = arith.constant 0.707106769 : f32
      %216 = vector.broadcast %cst_101 : f32 to vector<24x128xf32>
      %217 = arith.mulf %213, %216 : vector<24x128xf32>
      %cst_102 = arith.constant 0.000000e+00 : f32
      %218 = vector.broadcast %cst_102 : f32 to vector<24x128xf32>
      %219 = arith.cmpf oge, %217, %218 : vector<24x128xf32>
      %cst_103 = arith.constant 1.000000e+00 : f32
      %cst_104 = arith.constant -1.000000e+00 : f32
      %220 = vector.broadcast %cst_103 : f32 to vector<24x128xf32>
      %221 = vector.broadcast %cst_104 : f32 to vector<24x128xf32>
      %222 = arith.select %219, %220, %221 : vector<24x128xi1>, vector<24x128xf32>
      %223 = math.absf %217 : vector<24x128xf32>
      %cst_105 = arith.constant 0.327591091 : f32
      %224 = vector.broadcast %cst_105 : f32 to vector<24x128xf32>
      %225 = arith.mulf %224, %223 : vector<24x128xf32>
      %cst_106 = arith.constant 1.000000e+00 : f32
      %226 = vector.broadcast %cst_106 : f32 to vector<24x128xf32>
      %227 = arith.addf %226, %225 : vector<24x128xf32>
      %cst_107 = arith.constant 1.000000e+00 : f32
      %228 = vector.broadcast %cst_107 : f32 to vector<24x128xf32>
      %229 = arith.divf %228, %227 : vector<24x128xf32>
      %cst_108 = arith.constant 1.06140542 : f32
      %230 = vector.broadcast %cst_108 : f32 to vector<24x128xf32>
      %231 = arith.mulf %230, %229 : vector<24x128xf32>
      %cst_109 = arith.constant -1.45315206 : f32
      %232 = vector.broadcast %cst_109 : f32 to vector<24x128xf32>
      %233 = arith.addf %231, %232 : vector<24x128xf32>
      %234 = arith.mulf %233, %229 : vector<24x128xf32>
      %cst_110 = arith.constant 1.42141378 : f32
      %235 = vector.broadcast %cst_110 : f32 to vector<24x128xf32>
      %236 = arith.addf %234, %235 : vector<24x128xf32>
      %237 = arith.mulf %236, %229 : vector<24x128xf32>
      %cst_111 = arith.constant -0.284496725 : f32
      %238 = vector.broadcast %cst_111 : f32 to vector<24x128xf32>
      %239 = arith.addf %237, %238 : vector<24x128xf32>
      %240 = arith.mulf %239, %229 : vector<24x128xf32>
      %cst_112 = arith.constant 0.254829586 : f32
      %241 = vector.broadcast %cst_112 : f32 to vector<24x128xf32>
      %242 = arith.addf %240, %241 : vector<24x128xf32>
      %243 = arith.mulf %242, %229 : vector<24x128xf32>
      %cst_113 = arith.constant 0.000000e+00 : f32
      %244 = vector.broadcast %cst_113 : f32 to vector<24x128xf32>
      %245 = arith.subf %244, %223 : vector<24x128xf32>
      %246 = arith.mulf %245, %223 : vector<24x128xf32>
      %247 = math.exp %246 : vector<24x128xf32>
      %248 = arith.mulf %243, %247 : vector<24x128xf32>
      %cst_114 = arith.constant 1.000000e+00 : f32
      %249 = vector.broadcast %cst_114 : f32 to vector<24x128xf32>
      %250 = arith.subf %249, %248 : vector<24x128xf32>
      %251 = arith.mulf %222, %250 : vector<24x128xf32>
      %cst_115 = arith.constant 1.000000e+00 : f32
      %252 = vector.broadcast %cst_115 : f32 to vector<24x128xf32>
      %253 = arith.addf %252, %251 : vector<24x128xf32>
      %254 = arith.mulf %215, %253 : vector<24x128xf32>
      %255 = arith.index_cast %arg29 : i32 to index
      %c0_116 = arith.constant 0 : index
      %c0_117 = arith.constant 0 : index
      %256 = vector.load %arg19[%255, %c0_116, %c0_117] : memref<8x128x32xf32, #tpu.memory_space<vmem>>, vector<1x128x32xf32>
      %257 = vector.shape_cast %256 : vector<1x128x32xf32> to vector<128x32xf32>
      %cst_118 = arith.constant dense<0.000000e+00> : vector<24x32xf32>
      %258 = tpu.matmul %254, %257, %cst_118 {dimension_numbers = #tpu.dot_dimension_numbers<[1], [0], [0], [1], [0, 0, 1, 1], [], []>} : vector<24x128xf32>, vector<128x32xf32>, vector<24x32xf32> -> vector<24x32xf32>
      %259 = arith.index_cast %arg29 : i32 to index
      %c0_119 = arith.constant 0 : index
      %c0_120 = arith.constant 0 : index
      %260 = vector.load %arg20[%259, %c0_119, %c0_120] : memref<8x1x32xf32, #tpu.memory_space<vmem>>, vector<1x1x32xf32>
      %261 = vector.shape_cast %260 : vector<1x1x32xf32> to vector<1x32xf32>
      %262 = vector.broadcast %261 : vector<1x32xf32> to vector<24x32xf32>
      %263 = arith.addf %258, %262 : vector<24x32xf32>
      %264 = arith.addf %176, %263 : vector<24x32xf32>
      %c0_121 = arith.constant 0 : index
      %c0_122 = arith.constant 0 : index
      %265 = vector.load %arg26[%c0_121, %c0_122] : memref<24x32xf32, #tpu.memory_space<vmem>>, vector<24x32xf32>
      tpu.vector_store %arg26[%c0_121, %c0_122], %264 {strides = array<i32>} : memref<24x32xf32, #tpu.memory_space<vmem>>, vector<24x32xf32>,
      %c3_i32 = arith.constant 3 : i32
      %266 = arith.cmpi eq, %arg29, %c3_i32 : i32
      %267 = arith.extui %266 : i1 to i32
      %c0_i32_123 = arith.constant 0 : i32
      %268 = arith.cmpi ne, %267, %c0_i32_123 : i32
      scf.if %268 {
        %c0_125 = arith.constant 0 : index
        %c0_126 = arith.constant 0 : index
        %272 = vector.load %arg5[%c0_125, %c0_126] : memref<1x24xf32, #tpu.memory_space<vmem>>, vector<1x24xf32>
        %cst_127 = arith.constant dense<0.000000e+00> : vector<1x32xf32>
        %273 = tpu.matmul %272, %264, %cst_127 {dimension_numbers = #tpu.dot_dimension_numbers<[1], [0], [0], [1], [0, 0, 1, 1], [], []>} : vector<1x24xf32>, vector<24x32xf32>, vector<1x32xf32> -> vector<1x32xf32>
        %c0_128 = arith.constant 0 : index
        %c0_129 = arith.constant 0 : index
        %274 = vector.load %arg27[%c0_128, %c0_129] : memref<1x32xf32, #tpu.memory_space<vmem>>, vector<1x32xf32>
        tpu.vector_store %arg27[%c0_128, %c0_129], %273 {strides = array<i32>} : memref<1x32xf32, #tpu.memory_space<vmem>>, vector<1x32xf32>,
      } else {
      }
      %c7_i32 = arith.constant 7 : i32
      %269 = arith.cmpi eq, %arg29, %c7_i32 : i32
      %270 = arith.extui %269 : i1 to i32
      %c0_i32_124 = arith.constant 0 : i32
      %271 = arith.cmpi ne, %270, %c0_i32_124 : i32
      scf.if %271 {
        %c0_125 = arith.constant 0 : index
        %c0_126 = arith.constant 0 : index
        %272 = vector.load %arg5[%c0_125, %c0_126] : memref<1x24xf32, #tpu.memory_space<vmem>>, vector<1x24xf32>
        %cst_127 = arith.constant dense<0.000000e+00> : vector<1x32xf32>
        %273 = tpu.matmul %272, %264, %cst_127 {dimension_numbers = #tpu.dot_dimension_numbers<[1], [0], [0], [1], [0, 0, 1, 1], [], []>} : vector<1x24xf32>, vector<24x32xf32>, vector<1x32xf32> -> vector<1x32xf32>
        %c0_128 = arith.constant 0 : index
        %c0_129 = arith.constant 0 : index
        %274 = vector.load %arg28[%c0_128, %c0_129] : memref<1x32xf32, #tpu.memory_space<vmem>>, vector<1x32xf32>
        tpu.vector_store %arg28[%c0_128, %c0_129], %273 {strides = array<i32>} : memref<1x32xf32, #tpu.memory_space<vmem>>, vector<1x32xf32>,
      } else {
      }
    }
    %c8_i32_15 = arith.constant 8 : i32
    %c0_16 = arith.constant 0 : index
    %c0_17 = arith.constant 0 : index
    %14 = vector.load %arg26[%c0_16, %c0_17] : memref<24x32xf32, #tpu.memory_space<vmem>>, vector<24x32xf32>
    %c0_18 = arith.constant 0 : index
    %c0_19 = arith.constant 0 : index
    %15 = vector.load %arg21[%c0_18, %c0_19] : memref<1x32xf32, #tpu.memory_space<vmem>>, vector<1x32xf32>
    %c0_20 = arith.constant 0 : index
    %c0_21 = arith.constant 0 : index
    %16 = vector.load %arg22[%c0_20, %c0_21] : memref<1x32xf32, #tpu.memory_space<vmem>>, vector<1x32xf32>
    %cst_22 = arith.constant dense<0.000000e+00> : vector<24xf32>
    %17 = vector.multi_reduction <add>, %14, %cst_22 [1] : vector<24x32xf32> to vector<24xf32>
    %18 = vector.shape_cast %17 : vector<24xf32> to vector<24x1xf32>
    %cst_23 = arith.constant 3.200000e+01 : f32
    %19 = vector.broadcast %cst_23 : f32 to vector<24x1xf32>
    %20 = arith.divf %18, %19 : vector<24x1xf32>
    %21 = vector.broadcast %20 : vector<24x1xf32> to vector<24x32xf32>
    %22 = arith.subf %14, %21 : vector<24x32xf32>
    %23 = arith.mulf %22, %22 : vector<24x32xf32>
    %cst_24 = arith.constant dense<0.000000e+00> : vector<24xf32>
    %24 = vector.multi_reduction <add>, %23, %cst_24 [1] : vector<24x32xf32> to vector<24xf32>
    %25 = vector.shape_cast %24 : vector<24xf32> to vector<24x1xf32>
    %cst_25 = arith.constant 3.200000e+01 : f32
    %26 = vector.broadcast %cst_25 : f32 to vector<24x1xf32>
    %27 = arith.divf %25, %26 : vector<24x1xf32>
    %28 = vector.broadcast %20 : vector<24x1xf32> to vector<24x32xf32>
    %29 = arith.subf %14, %28 : vector<24x32xf32>
    %cst_26 = arith.constant 9.99999997E-7 : f32
    %30 = vector.broadcast %cst_26 : f32 to vector<24x1xf32>
    %31 = arith.addf %27, %30 : vector<24x1xf32>
    %32 = math.rsqrt %31 : vector<24x1xf32>
    %33 = vector.broadcast %32 : vector<24x1xf32> to vector<24x32xf32>
    %34 = arith.mulf %29, %33 : vector<24x32xf32>
    %35 = vector.broadcast %15 : vector<1x32xf32> to vector<24x32xf32>
    %36 = arith.mulf %34, %35 : vector<24x32xf32>
    %37 = vector.broadcast %16 : vector<1x32xf32> to vector<24x32xf32>
    %38 = arith.addf %36, %37 : vector<24x32xf32>
    %c0_27 = arith.constant 0 : index
    %c0_28 = arith.constant 0 : index
    %39 = vector.load %arg5[%c0_27, %c0_28] : memref<1x24xf32, #tpu.memory_space<vmem>>, vector<1x24xf32>
    %cst_29 = arith.constant dense<0.000000e+00> : vector<1x32xf32>
    %40 = tpu.matmul %39, %38, %cst_29 {dimension_numbers = #tpu.dot_dimension_numbers<[1], [0], [0], [1], [0, 0, 1, 1], [], []>} : vector<1x24xf32>, vector<24x32xf32>, vector<1x32xf32> -> vector<1x32xf32>
    %c0_30 = arith.constant 0 : index
    %c0_31 = arith.constant 0 : index
    %41 = vector.load %arg6[%c0_30, %c0_31] : memref<1x24xf32, #tpu.memory_space<vmem>>, vector<1x24xf32>
    %cst_32 = arith.constant dense<0.000000e+00> : vector<1x32xf32>
    %42 = tpu.matmul %41, %38, %cst_32 {dimension_numbers = #tpu.dot_dimension_numbers<[1], [0], [0], [1], [0, 0, 1, 1], [], []>} : vector<1x24xf32>, vector<24x32xf32>, vector<1x32xf32> -> vector<1x32xf32>
    %c0_33 = arith.constant 0 : index
    %c0_34 = arith.constant 0 : index
    %43 = vector.load %arg23[%c0_33, %c0_34] : memref<32x32xf32, #tpu.memory_space<vmem>>, vector<32x32xf32>
    %cst_35 = arith.constant dense<0.000000e+00> : vector<1x32xf32>
    %44 = tpu.matmul %42, %43, %cst_35 {dimension_numbers = #tpu.dot_dimension_numbers<[1], [0], [0], [1], [0, 0, 1, 1], [], []>} : vector<1x32xf32>, vector<32x32xf32>, vector<1x32xf32> -> vector<1x32xf32>
    %c0_36 = arith.constant 0 : index
    %c0_37 = arith.constant 0 : index
    %45 = vector.load %arg24[%c0_36, %c0_37] : memref<1x32xf32, #tpu.memory_space<vmem>>, vector<1x32xf32>
    %46 = arith.addf %44, %45 : vector<1x32xf32>
    %c0_38 = arith.constant 0 : index
    %c0_39 = arith.constant 0 : index
    %47 = vector.load %arg27[%c0_38, %c0_39] : memref<1x32xf32, #tpu.memory_space<vmem>>, vector<1x32xf32>
    %c0_40 = arith.constant 0 : index
    %c0_41 = arith.constant 0 : index
    %48 = vector.load %arg28[%c0_40, %c0_41] : memref<1x32xf32, #tpu.memory_space<vmem>>, vector<1x32xf32>
    %49 = tpu.concatenate %47, %48, %40, %46 in 1 : vector<1x32xf32>, vector<1x32xf32>, vector<1x32xf32>, vector<1x32xf32> -> vector<1x128xf32>
    %c0_42 = arith.constant 0 : index
    %c0_43 = arith.constant 0 : index
    %c0_44 = arith.constant 0 : index
    %50 = vector.load %arg25[%c0_42, %c0_43, %c0_44] : memref<1x1x128xf32, #tpu.memory_space<vmem>>, vector<1x1x128xf32>
    %51 = vector.shape_cast %50 : vector<1x1x128xf32> to vector<1x128xf32>
    %52 = vector.shape_cast %49 : vector<1x128xf32> to vector<1x1x128xf32>
    tpu.vector_store %arg25[%c0_42, %c0_43, %c0_44], %52 {strides = array<i32>} : memref<1x1x128xf32, #tpu.memory_space<vmem>>, vector<1x1x128xf32>,
    return
  }
  func.func @transform_0(%arg0: i32) -> (i32, i32, i32) {
    %c0_i32 = arith.constant 0 : i32
    %c0_i32_0 = arith.constant 0 : i32
    %c0_i32_1 = arith.constant 0 : i32
    return %arg0, %c0_i32, %c0_i32_0 : i32, i32, i32
  }
  func.func @transform_1(%arg0: i32) -> (i32, i32) {
    %c0_i32 = arith.constant 0 : i32
    %c0_i32_0 = arith.constant 0 : i32
    %c0_i32_1 = arith.constant 0 : i32
    return %c0_i32, %c0_i32_0 : i32, i32
  }
  func.func @transform_2(%arg0: i32) -> (i32, i32) {
    %c0_i32 = arith.constant 0 : i32
    %c0_i32_0 = arith.constant 0 : i32
    %c0_i32_1 = arith.constant 0 : i32
    return %c0_i32, %c0_i32_0 : i32, i32
  }
  func.func @transform_3(%arg0: i32) -> (i32, i32) {
    %c0_i32 = arith.constant 0 : i32
    %c0_i32_0 = arith.constant 0 : i32
    %c0_i32_1 = arith.constant 0 : i32
    return %c0_i32, %c0_i32_0 : i32, i32
  }
  func.func @transform_4(%arg0: i32) -> (i32, i32) {
    %c0_i32 = arith.constant 0 : i32
    %c0_i32_0 = arith.constant 0 : i32
    %c0_i32_1 = arith.constant 0 : i32
    return %c0_i32, %c0_i32_0 : i32, i32
  }
  func.func @transform_5(%arg0: i32) -> (i32, i32) {
    %c0_i32 = arith.constant 0 : i32
    %c0_i32_0 = arith.constant 0 : i32
    %c0_i32_1 = arith.constant 0 : i32
    return %c0_i32, %c0_i32_0 : i32, i32
  }
  func.func @transform_6(%arg0: i32) -> (i32, i32) {
    %c0_i32 = arith.constant 0 : i32
    %c0_i32_0 = arith.constant 0 : i32
    %c0_i32_1 = arith.constant 0 : i32
    return %c0_i32, %c0_i32_0 : i32, i32
  }
  func.func @transform_7(%arg0: i32) -> (i32, i32) {
    %c0_i32 = arith.constant 0 : i32
    %c0_i32_0 = arith.constant 0 : i32
    %c0_i32_1 = arith.constant 0 : i32
    return %c0_i32, %c0_i32_0 : i32, i32
  }
  func.func @transform_8(%arg0: i32) -> (i32, i32, i32) {
    %c0_i32 = arith.constant 0 : i32
    %c0_i32_0 = arith.constant 0 : i32
    %c0_i32_1 = arith.constant 0 : i32
    %c0_i32_2 = arith.constant 0 : i32
    return %c0_i32, %c0_i32_0, %c0_i32_1 : i32, i32, i32
  }
  func.func @transform_9(%arg0: i32) -> (i32, i32, i32) {
    %c0_i32 = arith.constant 0 : i32
    %c0_i32_0 = arith.constant 0 : i32
    %c0_i32_1 = arith.constant 0 : i32
    %c0_i32_2 = arith.constant 0 : i32
    return %c0_i32, %c0_i32_0, %c0_i32_1 : i32, i32, i32
  }
  func.func @transform_10(%arg0: i32) -> (i32, i32, i32) {
    %c0_i32 = arith.constant 0 : i32
    %c0_i32_0 = arith.constant 0 : i32
    %c0_i32_1 = arith.constant 0 : i32
    %c0_i32_2 = arith.constant 0 : i32
    return %c0_i32, %c0_i32_0, %c0_i32_1 : i32, i32, i32
  }
  func.func @transform_11(%arg0: i32) -> (i32, i32, i32) {
    %c0_i32 = arith.constant 0 : i32
    %c0_i32_0 = arith.constant 0 : i32
    %c0_i32_1 = arith.constant 0 : i32
    %c0_i32_2 = arith.constant 0 : i32
    return %c0_i32, %c0_i32_0, %c0_i32_1 : i32, i32, i32
  }
  func.func @transform_12(%arg0: i32) -> (i32, i32, i32) {
    %c0_i32 = arith.constant 0 : i32
    %c0_i32_0 = arith.constant 0 : i32
    %c0_i32_1 = arith.constant 0 : i32
    %c0_i32_2 = arith.constant 0 : i32
    return %c0_i32, %c0_i32_0, %c0_i32_1 : i32, i32, i32
  }
  func.func @transform_13(%arg0: i32) -> (i32, i32, i32) {
    %c0_i32 = arith.constant 0 : i32
    %c0_i32_0 = arith.constant 0 : i32
    %c0_i32_1 = arith.constant 0 : i32
    %c0_i32_2 = arith.constant 0 : i32
    return %c0_i32, %c0_i32_0, %c0_i32_1 : i32, i32, i32
  }
  func.func @transform_14(%arg0: i32) -> (i32, i32, i32) {
    %c0_i32 = arith.constant 0 : i32
    %c0_i32_0 = arith.constant 0 : i32
    %c0_i32_1 = arith.constant 0 : i32
    %c0_i32_2 = arith.constant 0 : i32
    return %c0_i32, %c0_i32_0, %c0_i32_1 : i32, i32, i32
  }
  func.func @transform_15(%arg0: i32) -> (i32, i32, i32) {
    %c0_i32 = arith.constant 0 : i32
    %c0_i32_0 = arith.constant 0 : i32
    %c0_i32_1 = arith.constant 0 : i32
    %c0_i32_2 = arith.constant 0 : i32
    return %c0_i32, %c0_i32_0, %c0_i32_1 : i32, i32, i32
  }
  func.func @transform_16(%arg0: i32) -> (i32, i32, i32) {
    %c0_i32 = arith.constant 0 : i32
    %c0_i32_0 = arith.constant 0 : i32
    %c0_i32_1 = arith.constant 0 : i32
    %c0_i32_2 = arith.constant 0 : i32
    return %c0_i32, %c0_i32_0, %c0_i32_1 : i32, i32, i32
  }
  func.func @transform_17(%arg0: i32) -> (i32, i32, i32) {
    %c0_i32 = arith.constant 0 : i32
    %c0_i32_0 = arith.constant 0 : i32
    %c0_i32_1 = arith.constant 0 : i32
    %c0_i32_2 = arith.constant 0 : i32
    return %c0_i32, %c0_i32_0, %c0_i32_1 : i32, i32, i32
  }
  func.func @transform_18(%arg0: i32) -> (i32, i32, i32) {
    %c0_i32 = arith.constant 0 : i32
    %c0_i32_0 = arith.constant 0 : i32
    %c0_i32_1 = arith.constant 0 : i32
    %c0_i32_2 = arith.constant 0 : i32
    return %c0_i32, %c0_i32_0, %c0_i32_1 : i32, i32, i32
  }
  func.func @transform_19(%arg0: i32) -> (i32, i32, i32) {
    %c0_i32 = arith.constant 0 : i32
    %c0_i32_0 = arith.constant 0 : i32
    %c0_i32_1 = arith.constant 0 : i32
    %c0_i32_2 = arith.constant 0 : i32
    return %c0_i32, %c0_i32_0, %c0_i32_1 : i32, i32, i32
  }
  func.func @transform_20(%arg0: i32) -> (i32, i32) {
    %c0_i32 = arith.constant 0 : i32
    %c0_i32_0 = arith.constant 0 : i32
    %c0_i32_1 = arith.constant 0 : i32
    return %c0_i32, %c0_i32_0 : i32, i32
  }
  func.func @transform_21(%arg0: i32) -> (i32, i32) {
    %c0_i32 = arith.constant 0 : i32
    %c0_i32_0 = arith.constant 0 : i32
    %c0_i32_1 = arith.constant 0 : i32
    return %c0_i32, %c0_i32_0 : i32, i32
  }
  func.func @transform_22(%arg0: i32) -> (i32, i32) {
    %c0_i32 = arith.constant 0 : i32
    %c0_i32_0 = arith.constant 0 : i32
    %c0_i32_1 = arith.constant 0 : i32
    return %c0_i32, %c0_i32_0 : i32, i32
  }
  func.func @transform_23(%arg0: i32) -> (i32, i32) {
    %c0_i32 = arith.constant 0 : i32
    %c0_i32_0 = arith.constant 0 : i32
    %c0_i32_1 = arith.constant 0 : i32
    return %c0_i32, %c0_i32_0 : i32, i32
  }
  func.func @transform_24(%arg0: i32) -> (i32, i32, i32) {
    %c0_i32 = arith.constant 0 : i32
    %c0_i32_0 = arith.constant 0 : i32
    %c0_i32_1 = arith.constant 0 : i32
    return %arg0, %c0_i32, %c0_i32_0 : i32, i32, i32
  }
}

</mosaic_0001>

<bundles_post_ra>
// kernel: distillable_vit_forward.1
= control target key start
LH: loop header
LB: loop body
LE: loop exit
PB: predicated region body
PF: predicated region fallthrough
CT: control target
= control target key end

     0   :  { %s4841_s0 = inlined_call_operand.vmem [shape: f32[2,16,48], index: 0, kind: input, shape index: {}]   ;;  %s4842_s1 = inlined_call_operand.vmem [shape: f32[24,16], index: 1, kind: input, shape index: {}]   ;;  %s4843_s2 = inlined_call_operand.vmem [shape: f32[24,32], index: 2, kind: input, shape index: {}]   ;;  %s4844_s3 = inlined_call_operand.vmem [shape: f32[24,24], index: 3, kind: input, shape index: {}]   ;;  %s4845_s4 = inlined_call_operand.vmem [shape: f32[1,24], index: 4, kind: input, shape index: {}]   ;;  %s4846_s5 = inlined_call_operand.vmem [shape: f32[1,24], index: 5, kind: input, shape index: {}]   ;;  %s4847_s6 = inlined_call_operand.vmem [shape: f32[48,32], index: 6, kind: input, shape index: {}]   ;;  %s4848_s7 = inlined_call_operand.vmem [shape: f32[1,32], index: 7, kind: input, shape index: {}]   ;;  %s4849_s8 = inlined_call_operand.vmem [shape: f32[8,1,32], index: 8, kind: input, shape index: {}]   ;;  %s4850_s9 = inlined_call_operand.vmem [shape: f32[8,1,32], index: 9, kind: input, shape index: {}]   ;;  %s4851_s10 = inlined_call_operand.vmem [shape: f32[8,32,96], index: 10, kind: input, shape index: {}]   ;;  %s4852_s11 = inlined_call_operand.vmem [shape: f32[8,1,96], index: 11, kind: input, shape index: {}]   ;;  %s4853_s12 = inlined_call_operand.vmem [shape: f32[8,32,32], index: 12, kind: input, shape index: {}]   ;;  %s4854_s13 = inlined_call_operand.vmem [shape: f32[8,1,32], index: 13, kind: input, shape index: {}]   ;;  %s4855_s14 = inlined_call_operand.vmem [shape: f32[8,1,32], index: 14, kind: input, shape index: {}]   ;;  %s4856_s15 = inlined_call_operand.vmem [shape: f32[8,1,32], index: 15, kind: input, shape index: {}]   ;;  %s4857_s16 = inlined_call_operand.vmem [shape: f32[8,32,128], index: 16, kind: input, shape index: {}]   ;;  %s4858_s17 = inlined_call_operand.vmem [shape: f32[8,1,128], index: 17, kind: input, shape index: {}]   ;;  %s4859_s18 = inlined_call_operand.vmem [shape: f32[8,128,32], index: 18, kind: input, shape index: {}]   ;;  %s4860_s19 = inlined_call_operand.vmem [shape: f32[8,1,32], index: 19, kind: input, shape index: {}]   ;;  %s4861_s20 = inlined_call_operand.vmem [shape: f32[1,32], index: 20, kind: input, shape index: {}]   ;;  %s4862_s21 = inlined_call_operand.vmem [shape: f32[1,32], index: 21, kind: input, shape index: {}]   ;;  %s4863_s22 = inlined_call_operand.vmem [shape: f32[32,32], index: 22, kind: input, shape index: {}]   ;;  %s4864_s23 = inlined_call_operand.vmem [shape: f32[1,32], index: 23, kind: input, shape index: {}]   ;;  %s4865_s24 = inlined_call_operand.vmem [shape: f32[2,1,128], index: 24, kind: output, shape index: {}]  }
   0x1   :  { %4870 = sst [smem:[#allocation5_spill]] %s4841_s0 }
   0x2   :  { %4871 = sst [smem:[#allocation6_spill]] %s4842_s1 }
   0x3   :  { %4872 = sst [smem:[#allocation7_spill]] %s4843_s2 }
   0x4   :  { %4873 = sst [smem:[#allocation8_spill]] %s4844_s3 }
   0x5   :  { %4874 = sst [smem:[#allocation9_spill]] %s4845_s4 }
   0x6   :  { %4875 = sst [smem:[#allocation10_spill]] %s4846_s5  ;;  %s4290_s5 = smov 0  }
   0x7   :  { %4876 = sst [smem:[#allocation11_spill]] %s4847_s6 }
   0x8   :  { %4877 = sst [smem:[#allocation12_spill]] %s4848_s7 }
   0x9   :  { %4878 = sst [smem:[#allocation13_spill]] %s4849_s8 }
   0xa LB: > { %s3326_s26 = sadd.s32 4294967295, %s4132_s5   ;;  %p3330_p0 = scmp.ge.s32.totalorder %s4132_s5, 1  ;;  %s4132_s5 = sphi %s4290_s5, %s34_s5  }
   0xb   : > { %p662_p1 = scmp.lt.s32.totalorder %s4132_s5, 3 }
   0xd   : > { %p663_p2 = pnand %p3330_p0, %p662_p1 }
   0xe   : > { %s4879_s6 = sld [smem:[#allocation11_spill]] (!%p663_p2)  ;;  %p726_p3 = scmp.lt.s32.totalorder (!%p663_p2), %s3326_s26, 1  ;;  %vm749_vm0 = vcmask (!%p663_p2), 392192   ;;  %v4138_v11 = vmov (!%p663_p2), 0.0|0.0   ;;  %vm4139_vm1 = vmmov (!%p663_p2), 0   ;;  %v4140_v12 = vmov (!%p663_p2), 0.0  }
   0xf   : > { %666 = sbr.rel (%p663_p2) target bundleno = 5540 (0x15a4), region = 116  ;;  %s4880_s30 = sld [smem:[#allocation5_spill]] (!%p663_p2)  ;;  %3873 = vmatprep.subr.bf16.mxu1 (!%p663_p2), %v4138_v11  ;;  %3566 = vmatprep.mubr.msk.f32.mxu1 (!%p663_p2), %vm4139_vm1, %v4140_v12  ;;  %vm837_vm2 = vcmask (!%p663_p2), 130048   ;;  %vm927_vm3 = vcmask (!%p663_p2), 261120  }
  0x10   : > { %s4881_s4 = sld [smem:[#allocation12_spill]] (!%p663_p2)  ;;  %s4882_s28 = sld [smem:[#allocation6_spill]] (!%p663_p2) }
  0x11   : > { %s4883_s8 = sld [smem:[#allocation8_spill]] (!%p663_p2)  ;;  %s4884_s7 = sld [smem:[#allocation7_spill]] (!%p663_p2) }
  0x12   : > { %s4372_s29 = smov (!%p663_p2), 0  }
  0x14   : > { %v736_v0 = vld [vmem:[%s4879_s6] sm:$0xff] (!%p663_p2)  ;;  %v737_v1 = vld [vmem:[%s4879_s6 + $0x8] sm:$0xff] (!%p663_p2)  ;;  %v738_v2 = vld [vmem:[%s4879_s6 + $0x10] sm:$0xff] (!%p663_p2) }
  0x15   : > { %v3861_v3 = vpack.c.bf16 (!%p663_p2), %v737_v1, %v736_v0  ;;  %v739_v4 = vld [vmem:[%s4879_s6 + $0x18] sm:$0xff] (!%p663_p2)  ;;  %v740_v6 = vld [vmem:[%s4879_s6 + $0x20] sm:$0xff] (!%p663_p2)  ;;  %v741_v7 = vld [vmem:[%s4879_s6 + $0x28] sm:$0xff] (!%p663_p2) }
  0x16   : > { %v3865_v5 = vpack.c.bf16 %v739_v4, %v738_v2  ;;  %s4894_s26 = smov (!%p726_p3, %s3326_s26), 1  ;;  %v3869_v8 = vpack.c.bf16 %v741_v7, %v740_v6  ;;  %v3333_v13 = vld [vmem:[%s4881_s4] ss:$0 sm:$0xff]  ;;  %v832_v20 = vld [vmem:[%s4882_s28 + $0x8] sm:$0xff]  ;;  %v833_v21 = vld [vmem:[%s4882_s28 + $0x10] sm:$0xff] }
  0x17   : > { %3862 = vmatprep.subr.bf16.mxu0 %v3861_v3  ;;  %s3415_s27 = sshll.u32 %s4894_s26, 4  ;;  %v831_v19 = vld [vmem:[%s4882_s28] sm:$0xff]  ;;  %v4353_v23 = vld [vmem:[%s4883_s8 + $0x8] sm:$0xff]  ;;  %v4358_v24 = vld [vmem:[%s4883_s8 + $0x10] sm:$0xff] }
  0x18   : > { %3864 = vmatpush3.bf16.msra.mxu0 %v3861_v3  ;;  %s730_s3 = scalar_lea.vmem %s4880_s30, %s3415_s27  ;;  %v4348_v22 = vld [vmem:[%s4883_s8] sm:$0xff]  ;;  %v835_v29 = vld [vmem:[%s4884_s7 + $0x8] sm:$0xff]  ;;  %v836_v33 = vld [vmem:[%s4884_s7 + $0x10] sm:$0xff] }
  0x19   : > { %3866 = vmatprep.subr.bf16.mxu0 %v3865_v5  ;;  %v734_v9 = vld [vmem:[%s730_s3] sm:$0xff]  ;;  %v735_v10 = vld [vmem:[%s730_s3 + $0x8] sm:$0xff] }
  0x1a   : > { %3559 = vmatprep.mubr.msk.f32.mxu0 %vm749_vm0, %v734_v9  ;;  %v834_v25 = vld [vmem:[%s4884_s7] sm:$0xff] }
  0x1c   : > { %3868 = vmatpush3.bf16.msra.mxu0 %v3865_v5 }
  0x1d   : > { %3870 = vmatprep.subr.bf16.mxu0 %v3869_v8 }
  0x20   : > { %3872 = vmatpush3.bf16.msra.mxu0 %v3869_v8 }
  0x23   : > { %3560 = vmatmul.mubr.msk.f32.vlgmr.msra.gmra.mrb[0].mxu0 %vm749_vm0, %v735_v10 }
  0xf6   : > { %v3561_v14 = vpop.f32.mrb[0].mxu0 }
  0xf7   : > { %v828_v15 = vadd.f32 %v3561_v14, %v3333_v13  ;;  %v822_v16 = vpop.f32.mrb[1].mxu0 }
  0xf8   : > { %v823_v17 = vadd.f32 %v3333_v13, %v822_v16 }
  0xfa   : > { %v3874_v18 = vpack.c.bf16 %v828_v15, %v823_v17 }
  0xfc   : > { %3875 = vmatpush3.bf16.msra.mxu1 %v3874_v18 }
  0xff   : > { %3567 = vmatmul.mubr.msk.f32.vlgmr.msra.gmra.mrb[0].mxu1 %vm837_vm2, %v831_v19 }
 0x100   : > { %3569 = vmatprep.mubr.msk.f32.mxu1 %vm4139_vm1, %v4140_v12 }
 0x103   : > { %3570 = vmatmul.mubr.msk.f32.gmra.mrb[2].mxu1 %vm837_vm2, %v832_v20 }
 0x104   : > { %3572 = vmatprep.mubr.msk.f32.mxu1 %vm4139_vm1, %v4140_v12 }
 0x107   : > { %3573 = vmatmul.mubr.msk.f32.gmra.mrb[4].mxu1 %vm837_vm2, %v833_v21 }
 0x1d2   : > { %v913_v26 = vpop.f32.mrb[0].mxu1 }
 0x1d3   : > { %v914_v27 = vadd.f32 %v913_v26, %v834_v25  ;;  %v3568_v28 = vpop.f32.mrb[1].mxu1 }
 0x1d5   : > { %928 = vst.msk [vmem:[#allocation2] sm:$0xff] %vm927_vm3, %v914_v27 }
 0x1d6   : > { %v918_v30 = vpop.f32.mrb[2].mxu1 }
 0x1d7   : > { %v919_v31 = vadd.f32 %v918_v30, %v835_v29  ;;  %v3571_v32 = vpop.f32.mrb[3].mxu1 }
 0x1d9   : > { %929 = vst.msk [vmem:[#allocation2 + $0x8] sm:$0xff] %vm927_vm3, %v919_v31 }
 0x1da   : > { %v923_v34 = vpop.f32.mrb[4].mxu1 }
 0x1db   : > { %v924_v35 = vadd.f32 %v923_v34, %v836_v33  ;;  %v3574_v36 = vpop.f32.mrb[5].mxu1 }
 0x1dd   : > { %930 = vst.msk [vmem:[#allocation2 + $0x10] sm:$0xff] %vm927_vm3, %v924_v35 }
 0x1de LB: >> { %v940_v37 = vld [vmem:[#allocation2] sm:$0xff]  ;;  %v4141_v58 = vmov 0.0|0.0   ;;  %s4385_s1 = sshll.u32 %s4136_s29, 5  ;;  %vm4142_vm4 = vmmov 0   ;;  %v4143_v59 = vmov 0.0   ;;  %s4885_s25 = sld [smem:[#allocation13_spill]]  ;;  %s4136_s29 = sphi %s4372_s29, %s939_s29  }
 0x1df   : >> { %v947_v40 = vsel %vm927_vm3, %v940_v37, 0.0  ;;  %3876 = vmatprep.subr.bf16.mxu1 %v4141_v58  ;;  %3583 = vmatprep.mubr.msk.f32.mxu1 %vm4142_vm4, %v4143_v59  ;;  %s1006_s0 = scalar_lea.vmem %s4851_s10, %s4385_s1  ;;  %s4145_s27 = smov 120   ;;  %vm1122_vm5 = vcmask 64512   ;;  %vm1215_vm7 = vcmask 195584  }
 0x1e0   : >> { %v941_v39 = vld [vmem:[#allocation2 + $0x8] sm:$0xff]  ;;  %948 = vadd.xlane.f32.xlu0 %v947_v40  ;;  %3886 = vmatprep.subr.bf16.mxu0 %v4141_v58  ;;  %v1007_v60 = vld [vmem:[%s1006_s0] sm:$0xff]  ;;  %v1009_v62 = vld [vmem:[%s1006_s0 + $0x10] sm:$0xff]  ;;  %s4146_s2 = smov 88   ;;  %s4148_s30 = smov 56  }
 0x1e1   : >> { %v950_v42 = vsel %vm927_vm3, %v941_v39, 0.0  ;;  %3613 = vmatprep.mubr.msk.f32.mxu0 %vm4142_vm4, %v4143_v59  ;;  %v1008_v61 = vld [vmem:[%s1006_s0 + $0x8] sm:$0xff]  ;;  %v1010_v0 = vld [vmem:[%s1006_s0 + $0x18] sm:$0xff]  ;;  %s945_s0 = scalar_lea.vmem %s4850_s9, %s4136_s29  ;;  %vm4438_vm6 = vmpackc.low %vm1122_vm5, %vm1122_vm5  ;;  %s4149_s3 = smov 80  }
 0x1e2   : >> { %v3877_v63 = vpack.c.bf16 %v1008_v61, %v1007_v60  ;;  %v3880_v1 = vpack.c.bf16 %v1010_v0, %v1009_v62  ;;  %v3340_v16 = vld [vmem:[%s945_s0] ss:$0 sm:$0xff]  ;;  %s4147_s0 = smov 64   ;;  %p3403_p4 = scmp.ne.s32.totalorder %s4136_s29, 3 }
 0x1e3   : >> { %vm4157_vm11 = vmmov (!%p3403_p4), 0   ;;  %vm2862_vm12 = vcmask (!%p3403_p4), 253952  }
 0x1e4   : >> { %v942_v38 = vld [vmem:[#allocation2 + $0x10] sm:$0xff]  ;;  %951 = vadd.xlane.f32.xlu0 %v950_v42  ;;  %3878 = vmatpush3.bf16.msra.mxu1 %v3877_v63  ;;  %s943_s4 = scalar_lea.vmem %s4885_s25, %s4136_s29  ;;  %s1011_s25 = scalar_lea.vmem %s4852_s11, %s4136_s29 }
 0x1e5   : >> { %v953_v41 = vsel %vm927_vm3, %v942_v38, 0.0  ;;  %3879 = vmatprep.subr.bf16.mxu1 %v4141_v58  ;;  %v3339_v14 = vld [vmem:[%s943_s4] ss:$0 sm:$0xff]  ;;  %s4144_s4 = smov 96  }
 0x1e6   : >> { %954 = vadd.xlane.f32.xlu1 %v953_v41  ;;  %v3342_v32 = vld [vmem:[%s1011_s25] ss:$0 sm:$0xff]  ;;  %s4150_s25 = smov 112  }
 0x1e8   : >> { %3881 = vmatpush3.bf16.msra.mxu1 %v3880_v1 }
 0x1e9   : >> { %3882 = vmatprep.subr.bf16.mxu1 %v4141_v58 }
 0x26d   : >> { %v949_v43 = vpop.xlane.xlu0 %948 }
 0x26e   : >> { %v957_v45 = vmul.f32 0.03125, %v949_v43 }
 0x270   : >> { %v960_v47 = vsub.f32 %v940_v37, %v957_v45 }
 0x271   : >> { %v952_v49 = vpop.xlane.xlu0 %951 }
 0x272   : >> { %v958_v50 = vmul.f32 0.03125, %v952_v49  ;;  %v963_v51 = vmul.f32 %v960_v47, %v960_v47 }
 0x273   : >> { %v955_v44 = vpop.xlane.xlu1 %954 }
 0x274   : >> { %v959_v46 = vmul.f32 0.03125, %v955_v44  ;;  %v961_v53 = vsub.f32 %v941_v39, %v958_v50  ;;  %v966_v54 = vsel %vm927_vm3, %v963_v51, 0.0 }
 0x275   : >> { %967 = vadd.xlane.f32.xlu1 %v966_v54 }
 0x276   : >> { %v962_v48 = vsub.f32 %v942_v38, %v959_v46  ;;  %v964_v56 = vmul.f32 %v961_v53, %v961_v53 }
 0x278   : >> { %v965_v52 = vmul.f32 %v962_v48, %v962_v48  ;;  %v969_v57 = vsel %vm927_vm3, %v964_v56, 0.0 }
 0x279   : >> { %970 = vadd.xlane.f32.xlu0 %v969_v57 }
 0x27a   : >> { %v972_v55 = vsel %vm927_vm3, %v965_v52, 0.0 }
 0x27b   : >> { %973 = vadd.xlane.f32.xlu1 %v972_v55 }
 0x302   : >> { %v968_v2 = vpop.xlane.xlu1 %967 }
 0x303   : >> { %v975_v3 = vmul.f32 0.03125, %v968_v2 }
 0x305   : >> { %v978_v4 = vadd.f32 1e-06, %v975_v3 }
 0x306   : >> { %v971_v6 = vpop.xlane.xlu0 %970 }
 0x307   : >> { %4041 = vrsqrt.f32 %v978_v4  ;;  %v976_v8 = vmul.f32 0.03125, %v971_v6 }
 0x308   : >> { %v974_v5 = vpop.xlane.xlu1 %973 }
 0x309   : >> { %v977_v7 = vmul.f32 0.03125, %v974_v5  ;;  %v979_v10 = vadd.f32 1e-06, %v976_v8 }
 0x30b   : >> { %v980_v9 = vadd.f32 1e-06, %v977_v7 }
 0x30d   : >> { %4043 = vrsqrt.f32 %v980_v9 }
 0x30e   : >> { %4045 = vrsqrt.f32 %v979_v10 }
 0x311   : >> { %v4042_v13 = vpop.eup %4041 }
 0x312   : >> { %v984_v15 = vmul.f32 %v4042_v13, %v960_v47 }
 0x314   : >> { %v993_v17 = vmul.f32 %v3339_v14, %v984_v15 }
 0x316   : >> { %v1002_v20 = vadd.f32 %v3340_v16, %v993_v17 }
 0x317   : >> { %v4044_v18 = vpop.eup %4043 }
 0x318   : >> { %v4046_v19 = vpop.eup %4045  ;;  %v986_v25 = vmul.f32 %v4044_v18, %v962_v48  ;;  %3584 = vmatmul.mubr.msk.f32.vlgmr.msra.gmra.mrb[0].mxu1 %vm927_vm3, %v1002_v20 }
 0x319   : >> { %v985_v21 = vmul.f32 %v4046_v19, %v961_v53  ;;  %3586 = vmatprep.mubr.msk.f32.mxu1 %vm4142_vm4, %v4143_v59 }
 0x31a   : >> { %v995_v28 = vmul.f32 %v3339_v14, %v986_v25 }
 0x31b   : >> { %v994_v26 = vmul.f32 %v3339_v14, %v985_v21 }
 0x31c   : >> { %v1004_v29 = vadd.f32 %v3340_v16, %v995_v28 }
 0x31d   : >> { %v1003_v27 = vadd.f32 %v3340_v16, %v994_v26 }
 0x31f   : >> { %3587 = vmatmul.mubr.msk.f32.gmra.mrb[2].mxu1 %vm927_vm3, %v1003_v27 }
 0x320   : >> { %3589 = vmatprep.mubr.msk.f32.mxu1 %vm4142_vm4, %v4143_v59 }
 0x323   : >> { %3590 = vmatmul.mubr.msk.f32.gmra.mrb[4].mxu1 %vm927_vm3, %v1004_v29 }
 0x324   : >> { %3598 = vmatprep.mubr.msk.f32.mxu1 %vm4142_vm4, %v4143_v59 }
 0x3eb   : >> { %v1094_v30 = vpop.f32.mrb[0].mxu1 }
 0x3ec   : >> { %v3585_v31 = vpop.f32.mrb[1].mxu1  ;;  %v4419_v34 = vadd.f32 %v3342_v32, %v1094_v30 }
 0x3f2   : >> { %v1099_v33 = vpop.f32.mrb[2].mxu1 }
 0x3f3   : >> { %v4421_v35 = vadd.f32 %v3342_v32, %v1099_v33  ;;  %v3588_v36 = vpop.f32.mrb[3].mxu1 }
 0x3f5   : >> { %v4425_v37 = vpack.i.bf16 %v4421_v35, %v4419_v34 }
 0x3f6   : >> { %v1104_v38 = vpop.f32.mrb[4].mxu1 }
 0x3f7   : >> { %v4427_v39 = vadd.f32 %v3342_v32, %v1104_v38  ;;  %4002 = vrot.lane.b32.xlu0 %v4425_v37, %s4144_s4  ;;  %v3591_v40 = vpop.f32.mrb[5].mxu1 }
 0x3f9   : >> { %1120 = vrot.lane.b32.xlu1 %v4427_v39, %s4144_s4  ;;  %s2428_s4 = scalar_lea.vmem %s4855_s14, %s4136_s29 }
 0x3fb   : >> { %1347 = vrot.lane.b32.xlu0 %v4419_v34, %s4145_s27 }
 0x3fd   : >> { %4007 = vrot.lane.b32.xlu1 %v4425_v37, %s4146_s2 }
 0x3ff   : >> { %1351 = vrot.lane.b32.xlu0 %v4427_v39, %s4145_s27 }
 0x401   : >> { %1357 = vrot.lane.b32.xlu1 %v4427_v39, %s4146_s2  ;;  %s4526_s2 = scalar_lea.vmem %s4853_s12, %s4385_s1 }
 0x405   : >> { %1349 = vrot.lane.b32.xlu1 %v4421_v35, %s4145_s27 }
 0x469   : >> { %v4003_v41 = vpop.permute.xlu0 %4002 }
 0x46a   : >> { %v4005_v42 = vunpack.i.h.bf16 %v4003_v41  ;;  %v4004_v43 = vunpack.i.l.bf16 %v4003_v41 }
 0x46b   : >> { %v1121_v44 = vpop.permute.xlu1 %1120 }
 0x46c   : >> { %v3883_v46 = vpack.c.bf16 %v4005_v42, %v4004_v43 }
 0x46d   : >> { %v1348_v52 = vpop.permute.xlu0 %1347 }
 0x46e   : >> { %3885 = vmatpush3.bf16.xpose.msk.msra.mxu1 %vm4438_vm6, %v3883_v46 }
 0x46f   : >> { %3596 = vmatprep.subr.mxu1 %v4143_v59  ;;  %v4008_v47 = vpop.permute.xlu1 %4007 }
 0x470   : >> { %v4010_v48 = vunpack.i.h.bf16 %v4008_v47  ;;  %v4009_v49 = vunpack.i.l.bf16 %v4008_v47 }
 0x471   : >> { %v1352_v54 = vpop.permute.xlu0 %1351 }
 0x472   : >> { %v3890_v50 = vpack.c.bf16 %v4010_v48, %v4009_v49 }
 0x473   : >> { %v1358_v51 = vpop.permute.xlu1 %1357 }
 0x476   : >> { %3597 = vmatpush3.xpose.msk.msra.mxu1 %vm1122_vm5, %v1121_v44 }
 0x477   : >> { %3889 = vmatprep.subr.bf16.mxu1 %v4141_v58  ;;  %v1350_v53 = vpop.permute.xlu1 %1349 }
 0x479   : >> { %3599 = vmatmul.mubr.msk.f32.vlgmr.msra.gmra.mrb[6].mxu1 %vm1122_vm5, %v4419_v34 }
 0x47a   : >> { %3892 = vmatpush3.bf16.xpose.msk.msra.mxu1 %vm4438_vm6, %v3890_v50  ;;  %3601 = vmatprep.mubr.msk.f32.mxu1 %vm4142_vm4, %v4143_v59 }
 0x47b   : >> { %3626 = vmatprep.subr.mxu1 %v4143_v59 }
 0x47d   : >> { %3602 = vmatmul.mubr.msk.f32.gmra.mrb[8].mxu1 %vm1122_vm5, %v4421_v35 }
 0x47e   : >> { %3604 = vmatprep.mubr.msk.f32.mxu1 %vm4142_vm4, %v4143_v59 }
 0x481   : >> { %3605 = vmatmul.mubr.msk.f32.gmra.mrb[10].mxu1 %vm1122_vm5, %v4427_v39 }
 0x482   : >> { %3627 = vmatpush3.xpose.msk.msra.mxu1 %vm1122_vm5, %v1358_v51  ;;  %3628 = vmatprep.mubr.msk.f32.mxu1 %vm4142_vm4, %v4143_v59 }
 0x483   : >> { %3652 = vmatprep.subr.mxu1 %v4143_v59 }
 0x485   : >> { %3629 = vmatmul.mubr.msk.f32.vlgmr.msra.gmra.mrb[12].mxu1 %vm1122_vm5, %v1348_v52 }
 0x486   : >> { %3631 = vmatprep.mubr.msk.f32.mxu1 %vm4142_vm4, %v4143_v59 }
 0x489   : >> { %3632 = vmatmul.mubr.msk.f32.gmra.mrb[14].mxu1 %vm1122_vm5, %v1350_v53 }
 0x48a   : >> { %3634 = vmatprep.mubr.msk.f32.mxu1 %vm4142_vm4, %v4143_v59 }
 0x48d   : >> { %3635 = vmatmul.mubr.msk.f32.gmra.mrb[16].mxu1 %vm1122_vm5, %v1352_v54 }
 0x48e   : >> { %3654 = vmatprep.mubr.msk.f32.mxu1 %vm4142_vm4, %v4143_v59 }
 0x54c   : >> { %v1201_v55 = vpop.f32.mrb[6].mxu1 }
 0x54d   : >> { %v1202_v56 = vadd.f32 %v1201_v55, %v4348_v22  ;;  %v3600_v57 = vpop.f32.mrb[7].mxu1 }
 0x54f   : >> { %v1216_v60 = vsel %vm1215_vm7, %v1202_v56, -inf }
 0x550   : >> { %1217 = vmax.xlane.f32.xlu1 %v1216_v60  ;;  %v1206_v61 = vpop.f32.mrb[8].mxu1 }
 0x551   : >> { %v1207_v62 = vadd.f32 %v1206_v61, %v4353_v23  ;;  %v3603_v63 = vpop.f32.mrb[9].mxu1 }
 0x553   : >> { %v1219_v0 = vsel %vm1215_vm7, %v1207_v62, -inf }
 0x554   : >> { %1220 = vmax.xlane.f32.xlu0 %v1219_v0  ;;  %v1211_v1 = vpop.f32.mrb[10].mxu1 }
 0x555   : >> { %v1212_v2 = vadd.f32 %v1211_v1, %v4358_v24  ;;  %v3606_v3 = vpop.f32.mrb[11].mxu1 }
 0x557   : >> { %v1222_v4 = vsel %vm1215_vm7, %v1212_v2, -inf }
 0x558   : >> { %1223 = vmax.xlane.f32.xlu0 %v1222_v4  ;;  %v1437_v5 = vpop.f32.mrb[12].mxu1 }
 0x559   : >> { %v1438_v6 = vadd.f32 %v1437_v5, %v4348_v22  ;;  %v3630_v7 = vpop.f32.mrb[13].mxu1 }
 0x55b   : >> { %v1451_v8 = vsel %vm1215_vm7, %v1438_v6, -inf }
 0x55c   : >> { %1452 = vmax.xlane.f32.xlu0 %v1451_v8  ;;  %v1442_v9 = vpop.f32.mrb[14].mxu1 }
 0x55d   : >> { %v1443_v10 = vadd.f32 %v1442_v9, %v4353_v23  ;;  %v3633_v13 = vpop.f32.mrb[15].mxu1 }
 0x55f   : >> { %v1454_v14 = vsel %vm1215_vm7, %v1443_v10, -inf }
 0x560   : >> { %1455 = vmax.xlane.f32.xlu1 %v1454_v14  ;;  %v1447_v15 = vpop.f32.mrb[16].mxu1 }
 0x561   : >> { %v1448_v16 = vadd.f32 %v1447_v15, %v4358_v24  ;;  %v3636_v17 = vpop.f32.mrb[17].mxu1 }
 0x563   : >> { %v1457_v18 = vsel %vm1215_vm7, %v1448_v16, -inf }
 0x564   : >> { %1458 = vmax.xlane.f32.xlu0 %v1457_v18 }
 0x571   : >> { %1253 = vrot.lane.b32.xlu1 %v4427_v39, %s4147_s0 }
 0x57a   : >> { %4012 = vrot.lane.b32.xlu0 %v4425_v37, %s4147_s0  ;;  %s4151_s0 = smov 48  }
 0x5dd   : >> { %v1218_v19 = vpop.xlane.xlu1 %1217 }
 0x5de   : >> { %v1225_v20 = vsub.f32 %v1202_v56, %v1218_v19 }
 0x5e0   : >> { %v1228_v21 = vmul.f32 1.442695, %v1225_v20 }
 0x5e1   : >> { %v1221_v25 = vpop.xlane.xlu0 %1220 }
 0x5e2   : >> { %4047 = vpow2.f32 %v1228_v21  ;;  %v1226_v26 = vsub.f32 %v1207_v62, %v1221_v25 }
 0x5e4   : >> { %v1230_v27 = vmul.f32 1.442695, %v1226_v26 }
 0x5e5   : >> { %v1224_v28 = vpop.xlane.xlu0 %1223 }
 0x5e6   : >> { %4049 = vpow2.f32 %v1230_v27  ;;  %v1227_v29 = vsub.f32 %v1212_v2, %v1224_v28  ;;  %v1109_v28 = vld [vmem:[%s4526_s2] sm:$0xff] }
 0x5e8   : >> { %v1232_v30 = vmul.f32 1.442695, %v1227_v29  ;;  %v1110_v29 = vld [vmem:[%s4526_s2 + $0x8] sm:$0xff] }
 0x5e9   : >> { %v1453_v31 = vpop.xlane.xlu0 %1452  ;;  %3653 = vmatpush3.msra.mxu1 %v1110_v29 }
 0x5ea   : >> { %4051 = vpow2.f32 %v1232_v30  ;;  %v1460_v32 = vsub.f32 %v1438_v6, %v1453_v31  ;;  %3896 = vmatprep.subr.bf16.mxu1 %v4141_v58 }
 0x5ec   : >> { %v4048_v33 = vpop.eup %4047  ;;  %v1463_v36 = vmul.f32 1.442695, %v1460_v32 }
 0x5ed   : >> { %v1456_v38 = vpop.xlane.xlu1 %1455  ;;  %v1234_v40 = vsel %vm1215_vm7, %v4048_v33, 0.0 }
 0x5ee   : >> { %4053 = vpow2.f32 %v1463_v36  ;;  %v1461_v41 = vsub.f32 %v1443_v10, %v1456_v38  ;;  %1235 = vadd.xlane.f32.xlu1 %v1234_v40 }
 0x5f0   : >> { %v4050_v42 = vpop.eup %4049  ;;  %v1465_v43 = vmul.f32 1.442695, %v1461_v41 }
 0x5f1   : >> { %v1459_v44 = vpop.xlane.xlu0 %1458  ;;  %v1237_v46 = vsel %vm1215_vm7, %v4050_v42, 0.0  ;;  %v1254_v60 = vpop.permute.xlu1 %1253 }
 0x5f2   : >> { %4055 = vpow2.f32 %v1465_v43  ;;  %v1462_v47 = vsub.f32 %v1448_v16, %v1459_v44  ;;  %1238 = vadd.xlane.f32.xlu0 %v1237_v46 }
 0x5f4   : >> { %v4052_v48 = vpop.eup %4051  ;;  %v1467_v49 = vmul.f32 1.442695, %v1462_v47 }
 0x5f5   : >> { %v4013_v50 = vpop.permute.xlu0 %4012  ;;  %v1240_v51 = vsel %vm1215_vm7, %v4052_v48, 0.0 }
 0x5f6   : >> { %4057 = vpow2.f32 %v1467_v49  ;;  %v4015_v52 = vunpack.i.h.bf16 %v4013_v50  ;;  %v4014_v53 = vunpack.i.l.bf16 %v4013_v50  ;;  %1241 = vadd.xlane.f32.xlu1 %v1240_v51 }
 0x5f8   : >> { %v4054_v54 = vpop.eup %4053  ;;  %v3887_v55 = vpack.c.bf16 %v4015_v52, %v4014_v53 }
 0x5f9   : >> { %v1469_v56 = vsel %vm1215_vm7, %v4054_v54, 0.0 }
 0x5fa   : >> { %1470 = vadd.xlane.f32.xlu0 %v1469_v56  ;;  %3888 = vmatpush3.bf16.msra.mxu0 %v3887_v55 }
 0x5fb   : >> { %3611 = vmatprep.subr.mxu0 %v4143_v59 }
 0x5fc   : >> { %v4056_v57 = vpop.eup %4055 }
 0x5fd   : >> { %v1472_v61 = vsel %vm1215_vm7, %v4056_v57, 0.0 }
 0x5fe   : >> { %1473 = vadd.xlane.f32.xlu1 %v1472_v61  ;;  %3612 = vmatpush3.msra.mxu0 %v1254_v60 }
 0x5ff   : >> { %3893 = vmatprep.subr.bf16.mxu0 %v4141_v58 }
 0x600   : >> { %v4058_v62 = vpop.eup %4057 }
 0x601   : >> { %v1475_v63 = vsel %vm1215_vm7, %v4058_v62, 0.0 }
 0x602   : >> { %1476 = vadd.xlane.f32.xlu1 %v1475_v63 }
 0x610   : >> { %1488 = vrot.lane.b32.xlu0 %v4427_v39, %s4148_s30 }
 0x613   : >> { %4017 = vrot.lane.b32.xlu1 %v4425_v37, %s4148_s30  ;;  %s4152_s30 = smov 72  }
 0x614   : >> { %1770 = vrot.lane.b32.xlu0 %v4427_v39, %s4149_s3 }
 0x617   : >> { %4022 = vrot.lane.b32.xlu1 %v4425_v37, %s4149_s3  ;;  %s4153_s3 = smov 104  }
 0x618   : >> { %1762 = vrot.lane.b32.xlu0 %v4421_v35, %s4150_s25 }
 0x61b   : >> { %1760 = vrot.lane.b32.xlu1 %v4419_v34, %s4150_s25 }
 0x61f   : >> { %1764 = vrot.lane.b32.xlu1 %v4427_v39, %s4150_s25  ;;  %s4154_s25 = smov 40  }
 0x67b   : >> { %v1236_v0 = vpop.xlane.xlu1 %1235 }
 0x67c   : >> { %4059 = vrcp.f32 %v1236_v0 }
 0x67f   : >> { %v1239_v1 = vpop.xlane.xlu0 %1238 }
 0x680   : >> { %4061 = vrcp.f32 %v1239_v1 }
 0x683   : >> { %v1242_v2 = vpop.xlane.xlu1 %1241 }
 0x684   : >> { %4063 = vrcp.f32 %v1242_v2 }
 0x686   : >> { %v4060_v3 = vpop.eup %4059 }
 0x687   : >> { %v1246_v4 = vmul.f32 %v4060_v3, %v4048_v33  ;;  %v1471_v6 = vpop.xlane.xlu0 %1470 }
 0x688   : >> { %4065 = vrcp.f32 %v1471_v6 }
 0x689   : >> { %3614 = vmatmul.mubr.msk.f32.vlgmr.msra.gmra.mrb[0].mxu0 %vm1215_vm7, %v1246_v4 }
 0x68a   : >> { %v4062_v5 = vpop.eup %4061  ;;  %3616 = vmatprep.mubr.msk.f32.mxu0 %vm4142_vm4, %v4143_v59 }
 0x68b   : >> { %v1474_v7 = vpop.xlane.xlu1 %1473  ;;  %v1247_v8 = vmul.f32 %v4062_v5, %v4050_v42  ;;  %v1489_v20 = vpop.permute.xlu0 %1488 }
 0x68c   : >> { %4067 = vrcp.f32 %v1474_v7 }
 0x68d   : >> { %3617 = vmatmul.mubr.msk.f32.gmra.mrb[2].mxu0 %vm1215_vm7, %v1247_v8 }
 0x68e   : >> { %v4064_v9 = vpop.eup %4063  ;;  %3619 = vmatprep.mubr.msk.f32.mxu0 %vm4142_vm4, %v4143_v59 }
 0x68f   : >> { %v1477_v10 = vpop.xlane.xlu1 %1476  ;;  %v1248_v13 = vmul.f32 %v4064_v9, %v4052_v48  ;;  %v1771_v50 = vpop.permute.xlu0 %1770 }
 0x690   : >> { %4069 = vrcp.f32 %v1477_v10 }
 0x691   : >> { %3620 = vmatmul.mubr.msk.f32.gmra.mrb[4].mxu0 %vm1215_vm7, %v1248_v13 }
 0x692   : >> { %3643 = vmatprep.mubr.msk.f32.mxu0 %vm4142_vm4, %v4143_v59  ;;  %v4066_v18 = vpop.eup %4065 }
 0x693   : >> { %v4018_v14 = vpop.permute.xlu1 %4017  ;;  %v1481_v19 = vmul.f32 %v4066_v18, %v4054_v54  ;;  %v1763_v53 = vpop.permute.xlu0 %1762 }
 0x694   : >> { %v4020_v15 = vunpack.i.h.bf16 %v4018_v14  ;;  %v4019_v16 = vunpack.i.l.bf16 %v4018_v14 }
 0x696   : >> { %v3894_v17 = vpack.c.bf16 %v4020_v15, %v4019_v16  ;;  %v4068_v21 = vpop.eup %4067 }
 0x697   : >> { %v1482_v25 = vmul.f32 %v4068_v21, %v4056_v57  ;;  %v4023_v40 = vpop.permute.xlu1 %4022 }
 0x698   : >> { %3895 = vmatpush3.bf16.msra.mxu0 %v3894_v17  ;;  %v4025_v41 = vunpack.i.h.bf16 %v4023_v40  ;;  %v4024_v42 = vunpack.i.l.bf16 %v4023_v40 }
 0x699   : >> { %3641 = vmatprep.subr.mxu0 %v4143_v59 }
 0x69a   : >> { %v4070_v26 = vpop.eup %4069  ;;  %v3897_v43 = vpack.c.bf16 %v4025_v41, %v4024_v42 }
 0x69b   : >> { %v1483_v27 = vmul.f32 %v4070_v26, %v4058_v62  ;;  %v1761_v52 = vpop.permute.xlu1 %1760 }
 0x69c   : >> { %3642 = vmatpush3.msra.mxu0 %v1489_v20 }
 0x69d   : >> { %3644 = vmatmul.mubr.msk.f32.vlgmr.msra.gmra.mrb[6].mxu0 %vm1215_vm7, %v1481_v19  ;;  %3663 = vmatprep.subr.mxu0 %v4143_v59 }
 0x69e   : >> { %3646 = vmatprep.mubr.msk.f32.mxu0 %vm4142_vm4, %v4143_v59  ;;  %3664 = vmatpush3.msra.mxu0 %v1109_v28 }
 0x69f   : >> { %3900 = vmatprep.subr.bf16.mxu0 %v4141_v58  ;;  %v1765_v54 = vpop.permute.xlu1 %1764 }
 0x6a1   : >> { %3647 = vmatmul.mubr.msk.f32.gmra.mrb[8].mxu0 %vm1215_vm7, %v1482_v25 }
 0x6a2   : >> { %3649 = vmatprep.mubr.msk.f32.mxu0 %vm4142_vm4, %v4143_v59 }
 0x6a5   : >> { %3650 = vmatmul.mubr.msk.f32.gmra.mrb[10].mxu0 %vm1215_vm7, %v1483_v27 }
 0x6a6   : >> { %3665 = vmatprep.mubr.msk.f32.mxu0 %vm4142_vm4, %v4143_v59 }
 0x75c   : >> { %v1333_v30 = vpop.f32.mrb[0].mxu0 }
 0x75d   : >> { %v3615_v31 = vpop.f32.mrb[1].mxu0  ;;  %3666 = vmatmul.mubr.msk.f32.vlgmr.msra.gmra.mrb[12].mxu0 %vm1122_vm5, %v1333_v30 }
 0x75e   : >> { %3668 = vmatprep.mubr.msk.f32.mxu0 %vm4142_vm4, %v4143_v59 }
 0x760   : >> { %v1338_v32 = vpop.f32.mrb[2].mxu0 }
 0x761   : >> { %v3618_v33 = vpop.f32.mrb[3].mxu0  ;;  %3669 = vmatmul.mubr.msk.f32.gmra.mrb[14].mxu0 %vm1122_vm5, %v1338_v32 }
 0x762   : >> { %3671 = vmatprep.mubr.msk.f32.mxu0 %vm4142_vm4, %v4143_v59 }
 0x764   : >> { %v1343_v36 = vpop.f32.mrb[4].mxu0 }
 0x765   : >> { %v3621_v38 = vpop.f32.mrb[5].mxu0  ;;  %3672 = vmatmul.mubr.msk.f32.gmra.mrb[16].mxu0 %vm1122_vm5, %v1343_v36 }
 0x766   : >> { %3695 = vmatprep.mubr.msk.f32.mxu0 %vm4142_vm4, %v4143_v59 }
 0x770   : >> { %v1568_v44 = vpop.f32.mrb[6].mxu0 }
 0x771   : >> { %v3645_v46 = vpop.f32.mrb[7].mxu0  ;;  %3655 = vmatmul.mubr.msk.f32.vlgmr.msra.gmra.mrb[18].mxu1 %vm1122_vm5, %v1568_v44 }
 0x772   : >> { %3899 = vmatpush3.bf16.xpose.msk.msra.mxu1 %vm4438_vm6, %v3897_v43  ;;  %3657 = vmatprep.mubr.msk.f32.mxu1 %vm4142_vm4, %v4143_v59 }
 0x773   : >> { %3678 = vmatprep.subr.mxu1 %v4143_v59 }
 0x774   : >> { %v1573_v47 = vpop.f32.mrb[8].mxu0 }
 0x775   : >> { %v3648_v48 = vpop.f32.mrb[9].mxu0  ;;  %3658 = vmatmul.mubr.msk.f32.gmra.mrb[20].mxu1 %vm1122_vm5, %v1573_v47 }
 0x776   : >> { %3660 = vmatprep.mubr.msk.f32.mxu1 %vm4142_vm4, %v4143_v59 }
 0x778   : >> { %v1578_v49 = vpop.f32.mrb[10].mxu0 }
 0x779   : >> { %v3651_v51 = vpop.f32.mrb[11].mxu0  ;;  %3661 = vmatmul.mubr.msk.f32.gmra.mrb[22].mxu1 %vm1122_vm5, %v1578_v49 }
 0x77a   : >> { %3679 = vmatpush3.xpose.msk.msra.mxu1 %vm1122_vm5, %v1771_v50  ;;  %3680 = vmatprep.mubr.msk.f32.mxu1 %vm4142_vm4, %v4143_v59 }
 0x77b   : >> { %3704 = vmatprep.subr.mxu1 %v4143_v59 }
 0x77d   : >> { %3681 = vmatmul.mubr.msk.f32.vlgmr.msra.gmra.mrb[24].mxu1 %vm1122_vm5, %v1761_v52 }
 0x77e   : >> { %3683 = vmatprep.mubr.msk.f32.mxu1 %vm4142_vm4, %v4143_v59 }
 0x781   : >> { %3684 = vmatmul.mubr.msk.f32.gmra.mrb[26].mxu1 %vm1122_vm5, %v1763_v53 }
 0x782   : >> { %3686 = vmatprep.mubr.msk.f32.mxu1 %vm4142_vm4, %v4143_v59 }
 0x785   : >> { %3687 = vmatmul.mubr.msk.f32.gmra.mrb[28].mxu1 %vm1122_vm5, %v1765_v54 }
 0x786   : >> { %3706 = vmatprep.mubr.msk.f32.mxu1 %vm4142_vm4, %v4143_v59 }
 0x830   : >> { %v1746_v55 = vpop.f32.mrb[12].mxu0 }
 0x831   : >> { %v3667_v56 = vpop.f32.mrb[13].mxu0 }
 0x834   : >> { %v1751_v57 = vpop.f32.mrb[14].mxu0 }
 0x835   : >> { %v3670_v60 = vpop.f32.mrb[15].mxu0 }
 0x838   : >> { %v1756_v61 = vpop.f32.mrb[16].mxu0 }
 0x839   : >> { %v3673_v62 = vpop.f32.mrb[17].mxu0 }
 0x844   : >> { %v1657_v63 = vpop.f32.mrb[18].mxu1 }
 0x845   : >> { %v4564_v0 = vadd.f32 %v1746_v55, %v1657_v63  ;;  %v3656_v1 = vpop.f32.mrb[19].mxu1 }
 0x848   : >> { %v1662_v2 = vpop.f32.mrb[20].mxu1 }
 0x849   : >> { %v4566_v3 = vadd.f32 %v1751_v57, %v1662_v2  ;;  %v3659_v4 = vpop.f32.mrb[21].mxu1 }
 0x84a   : >> { %v1111_v4 = vld [vmem:[%s4526_s2 + $0x10] sm:$0xff] }
 0x84b   : >> { %3705 = vmatpush3.msra.mxu1 %v1111_v4 }
 0x84c   : >> { %v1667_v5 = vpop.f32.mrb[22].mxu1  ;;  %3907 = vmatprep.subr.bf16.mxu1 %v4141_v58 }
 0x84d   : >> { %v4568_v6 = vadd.f32 %v1756_v61, %v1667_v5  ;;  %v3662_v7 = vpop.f32.mrb[23].mxu1 }
 0x850   : >> { %v1850_v8 = vpop.f32.mrb[24].mxu1 }
 0x851   : >> { %v1851_v9 = vadd.f32 %v1850_v8, %v4348_v22  ;;  %v3682_v10 = vpop.f32.mrb[25].mxu1 }
 0x853   : >> { %v1864_v13 = vsel %vm1215_vm7, %v1851_v9, -inf }
 0x854   : >> { %1865 = vmax.xlane.f32.xlu0 %v1864_v13  ;;  %v1855_v14 = vpop.f32.mrb[26].mxu1 }
 0x855   : >> { %v1856_v15 = vadd.f32 %v1855_v14, %v4353_v23  ;;  %v3685_v16 = vpop.f32.mrb[27].mxu1 }
 0x857   : >> { %v1867_v17 = vsel %vm1215_vm7, %v1856_v15, -inf }
 0x858   : >> { %1868 = vmax.xlane.f32.xlu1 %v1867_v17  ;;  %v1860_v18 = vpop.f32.mrb[28].mxu1 }
 0x859   : >> { %v1861_v19 = vadd.f32 %v1860_v18, %v4358_v24  ;;  %v3688_v20 = vpop.f32.mrb[29].mxu1 }
 0x85b   : >> { %v1870_v21 = vsel %vm1215_vm7, %v1861_v19, -inf }
 0x85c   : >> { %1871 = vmax.xlane.f32.xlu0 %v1870_v21 }
 0x869   : >> { %1901 = vrot.lane.b32.xlu1 %v4427_v39, %s4151_s0 }
 0x86d   : >> { %4032 = vrot.lane.b32.xlu1 %v4425_v37, %s4152_s30 }
 0x871   : >> { %2097 = vrot.lane.b32.xlu1 %v4427_v39, %s4152_s30  ;;  %s3401_s30 = sshll.u32 %s4136_s29, 7 }
 0x8e1   : >> { %v1866_v25 = vpop.xlane.xlu0 %1865 }
 0x8e2   : >> { %v1873_v26 = vsub.f32 %v1851_v9, %v1866_v25 }
 0x8e4   : >> { %v1876_v27 = vmul.f32 1.442695, %v1873_v26 }
 0x8e5   : >> { %v1869_v28 = vpop.xlane.xlu1 %1868 }
 0x8e6   : >> { %4071 = vpow2.f32 %v1876_v27  ;;  %v1874_v29 = vsub.f32 %v1856_v15, %v1869_v28 }
 0x8e8   : >> { %v1878_v30 = vmul.f32 1.442695, %v1874_v29 }
 0x8e9   : >> { %v1872_v31 = vpop.xlane.xlu0 %1871  ;;  %v1902_v44 = vpop.permute.xlu1 %1901 }
 0x8ea   : >> { %4073 = vpow2.f32 %v1878_v30  ;;  %v1875_v32 = vsub.f32 %v1861_v19, %v1872_v31 }
 0x8ec   : >> { %v1880_v33 = vmul.f32 1.442695, %v1875_v32 }
 0x8ed   : >> { %v4033_v46 = vpop.permute.xlu1 %4032 }
 0x8ee   : >> { %4075 = vpow2.f32 %v1880_v33  ;;  %v4035_v56 = vunpack.i.h.bf16 %v4033_v46  ;;  %v4034_v57 = vunpack.i.l.bf16 %v4033_v46 }
 0x8f0   : >> { %v4072_v36 = vpop.eup %4071  ;;  %v3904_v62 = vpack.c.bf16 %v4035_v56, %v4034_v57 }
 0x8f1   : >> { %v1882_v38 = vsel %vm1215_vm7, %v4072_v36, 0.0  ;;  %v2098_v48 = vpop.permute.xlu1 %2097 }
 0x8f2   : >> { %1883 = vadd.xlane.f32.xlu0 %v1882_v38 }
 0x8f4   : >> { %v4074_v40 = vpop.eup %4073 }
 0x8f5   : >> { %v1885_v41 = vsel %vm1215_vm7, %v4074_v40, 0.0 }
 0x8f6   : >> { %1886 = vadd.xlane.f32.xlu0 %v1885_v41 }
 0x8f8   : >> { %v4076_v42 = vpop.eup %4075 }
 0x8f9   : >> { %v1888_v43 = vsel %vm1215_vm7, %v4076_v42, 0.0 }
 0x8fa   : >> { %1889 = vadd.xlane.f32.xlu1 %v1888_v43 }
 0x90b   : >> { %2089 = vrot.lane.b32.xlu1 %v4421_v35, %s4153_s3 }
 0x90c   : >> { %4027 = vrot.lane.b32.xlu0 %v4425_v37, %s4151_s0  ;;  %s2430_s0 = scalar_lea.vmem %s4856_s15, %s4136_s29 }
 0x910   : >> { %2087 = vrot.lane.b32.xlu0 %v4419_v34, %s4153_s3 }
 0x914   : >> { %2091 = vrot.lane.b32.xlu0 %v4427_v39, %s4153_s3  ;;  %s2489_s3 = scalar_lea.vmem %s4857_s16, %s4385_s1 }
 0x97f   : >> { %v1884_v47 = vpop.xlane.xlu0 %1883 }
 0x980   : >> { %4077 = vrcp.f32 %v1884_v47 }
 0x983   : >> { %v1887_v49 = vpop.xlane.xlu0 %1886 }
 0x984   : >> { %4079 = vrcp.f32 %v1887_v49 }
 0x987   : >> { %v1890_v50 = vpop.xlane.xlu1 %1889  ;;  %v4028_v51 = vpop.permute.xlu0 %4027 }
 0x988   : >> { %v4030_v52 = vunpack.i.h.bf16 %v4028_v51  ;;  %v4029_v53 = vunpack.i.l.bf16 %v4028_v51  ;;  %4081 = vrcp.f32 %v1890_v50 }
 0x98a   : >> { %v3901_v54 = vpack.c.bf16 %v4030_v52, %v4029_v53  ;;  %v4078_v35 = vpop.eup %4077 }
 0x98b   : >> { %v1894_v34 = vmul.f32 %v4078_v35, %v4072_v36  ;;  %v2088_v1 = vpop.permute.xlu0 %2087  ;;  %v2090_v45 = vpop.permute.xlu1 %2089  ;;  %v1112_v35 = vld [vmem:[%s4526_s2 + $0x18] sm:$0xff]  ;;  %s2417_s2 = scalar_lea.vmem %s4854_s13, %s4136_s29 }
 0x98c   : >> { %3902 = vmatpush3.bf16.msra.mxu0 %v3901_v54 }
 0x98d   : >> { %3693 = vmatprep.subr.mxu0 %v4143_v59 }
 0x98e   : >> { %v4080_v55 = vpop.eup %4079 }
 0x98f   : >> { %v1895_v60 = vmul.f32 %v4080_v55, %v4074_v40  ;;  %v2092_v2 = vpop.permute.xlu0 %2091 }
 0x990   : >> { %3694 = vmatpush3.msra.mxu0 %v1902_v44 }
 0x991   : >> { %3696 = vmatmul.mubr.msk.f32.vlgmr.msra.gmra.mrb[18].mxu0 %vm1215_vm7, %v1894_v34  ;;  %3903 = vmatprep.subr.bf16.mxu0 %v4141_v58 }
 0x992   : >> { %3698 = vmatprep.mubr.msk.f32.mxu0 %vm4142_vm4, %v4143_v59  ;;  %v4082_v61 = vpop.eup %4081 }
 0x993   : >> { %v1896_v63 = vmul.f32 %v4082_v61, %v4076_v42 }
 0x995   : >> { %3699 = vmatmul.mubr.msk.f32.gmra.mrb[20].mxu0 %vm1215_vm7, %v1895_v60 }
 0x996   : >> { %3701 = vmatprep.mubr.msk.f32.mxu0 %vm4142_vm4, %v4143_v59 }
 0x997   : >> { %3906 = vmatpush3.bf16.xpose.msk.msra.mxu0 %vm4438_vm6, %v3904_v62 }
 0x998   : >> { %3719 = vmatprep.subr.mxu0 %v4143_v59 }
 0x999   : >> { %3702 = vmatmul.mubr.msk.f32.gmra.mrb[22].mxu0 %vm1215_vm7, %v1896_v63 }
 0x99a   : >> { %3721 = vmatprep.mubr.msk.f32.mxu0 %vm4142_vm4, %v4143_v59 }
 0x99f   : >> { %3720 = vmatpush3.xpose.msk.msra.mxu0 %vm1122_vm5, %v2098_v48 }
 0x9a0   : >> { %3745 = vmatprep.subr.mxu0 %v4143_v59 }
 0x9a2   : >> { %3722 = vmatmul.mubr.msk.f32.vlgmr.msra.gmra.mrb[24].mxu0 %vm1122_vm5, %v2088_v1 }
 0x9a3   : >> { %3724 = vmatprep.mubr.msk.f32.mxu0 %vm4142_vm4, %v4143_v59  ;;  %3746 = vmatpush3.msra.mxu0 %v1112_v35 }
 0x9a4   : >> { %3916 = vmatprep.subr.bf16.mxu0 %v4141_v58 }
 0x9a6   : >> { %3725 = vmatmul.mubr.msk.f32.gmra.mrb[26].mxu0 %vm1122_vm5, %v2090_v45 }
 0x9a7   : >> { %3727 = vmatprep.mubr.msk.f32.mxu0 %vm4142_vm4, %v4143_v59 }
 0x9aa   : >> { %3728 = vmatmul.mubr.msk.f32.gmra.mrb[28].mxu0 %vm1122_vm5, %v2092_v2 }
 0x9ab   : >> { %3747 = vmatprep.mubr.msk.f32.mxu0 %vm4142_vm4, %v4143_v59 }
 0xa64   : >> { %v1981_v5 = vpop.f32.mrb[18].mxu0 }
 0xa65   : >> { %v3697_v7 = vpop.f32.mrb[19].mxu0  ;;  %3707 = vmatmul.mubr.msk.f32.vlgmr.msra.gmra.mrb[30].mxu1 %vm1122_vm5, %v1981_v5 }
 0xa66   : >> { %3709 = vmatprep.mubr.msk.f32.mxu1 %vm4142_vm4, %v4143_v59 }
 0xa68   : >> { %v1986_v8 = vpop.f32.mrb[20].mxu0 }
 0xa69   : >> { %v3700_v9 = vpop.f32.mrb[21].mxu0  ;;  %3710 = vmatmul.mubr.msk.f32.gmra.mrb[32].mxu1 %vm1122_vm5, %v1986_v8 }
 0xa6a   : >> { %3712 = vmatprep.mubr.msk.f32.mxu1 %vm4142_vm4, %v4143_v59 }
 0xa6c   : >> { %v1991_v10 = vpop.f32.mrb[22].mxu0 }
 0xa6d   : >> { %v3703_v13 = vpop.f32.mrb[23].mxu0  ;;  %3713 = vmatmul.mubr.msk.f32.gmra.mrb[34].mxu1 %vm1122_vm5, %v1991_v10 }
 0xa6e   : >> { %3736 = vmatprep.mubr.msk.f32.mxu1 %vm4142_vm4, %v4143_v59 }
 0xa75   : >> { %v2177_v14 = vpop.f32.mrb[24].mxu0 }
 0xa76   : >> { %v2178_v15 = vadd.f32 %v2177_v14, %v4348_v22  ;;  %v3723_v16 = vpop.f32.mrb[25].mxu0 }
 0xa78   : >> { %v2191_v17 = vsel %vm1215_vm7, %v2178_v15, -inf }
 0xa79   : >> { %2192 = vmax.xlane.f32.xlu1 %v2191_v17  ;;  %v2182_v18 = vpop.f32.mrb[26].mxu0  ;;  %v3394_v17 = vld [vmem:[%s2417_s2] ss:$0 sm:$0xff]  ;;  %s2494_s2 = scalar_lea.vmem %s4858_s17, %s4136_s29 }
 0xa7a   : >> { %v2183_v19 = vadd.f32 %v2182_v18, %v4353_v23  ;;  %v3726_v20 = vpop.f32.mrb[27].mxu0  ;;  %v4113_v18 = vld [vmem:[#allocation2] sm:$0xff] }
 0xa7c   : >> { %v2194_v21 = vsel %vm1215_vm7, %v2183_v19, -inf }
 0xa7d   : >> { %2195 = vmax.xlane.f32.xlu0 %v2194_v21  ;;  %v2187_v25 = vpop.f32.mrb[28].mxu0 }
 0xa7e   : >> { %v2188_v26 = vadd.f32 %v2187_v25, %v4358_v24  ;;  %v3729_v27 = vpop.f32.mrb[29].mxu0 }
 0xa7f   : >> { %v4114_v27 = vld [vmem:[#allocation2 + $0x8] sm:$0xff] }
 0xa80   : >> { %v2197_v28 = vsel %vm1215_vm7, %v2188_v26, -inf }
 0xa81   : >> { %2198 = vmax.xlane.f32.xlu0 %v2197_v28 }
 0xb06   : >> { %v2193_v29 = vpop.xlane.xlu1 %2192 }
 0xb07   : >> { %v2200_v30 = vsub.f32 %v2178_v15, %v2193_v29 }
 0xb09   : >> { %v2203_v31 = vmul.f32 1.442695, %v2200_v30 }
 0xb0a   : >> { %v2196_v32 = vpop.xlane.xlu0 %2195 }
 0xb0b   : >> { %4083 = vpow2.f32 %v2203_v31  ;;  %v2201_v33 = vsub.f32 %v2183_v19, %v2196_v32 }
 0xb0d   : >> { %v2205_v36 = vmul.f32 1.442695, %v2201_v33 }
 0xb0e   : >> { %v2199_v38 = vpop.xlane.xlu0 %2198 }
 0xb0f   : >> { %4085 = vpow2.f32 %v2205_v36  ;;  %v2202_v40 = vsub.f32 %v2188_v26, %v2199_v38  ;;  %v4115_v36 = vld [vmem:[#allocation2 + $0x10] sm:$0xff] }
 0xb11   : >> { %v2207_v41 = vmul.f32 1.442695, %v2202_v40 }
 0xb13   : >> { %4087 = vpow2.f32 %v2207_v41 }
 0xb15   : >> { %v4084_v42 = vpop.eup %4083 }
 0xb16   : >> { %v2209_v43 = vsel %vm1215_vm7, %v4084_v42, 0.0 }
 0xb17   : >> { %2210 = vadd.xlane.f32.xlu0 %v2209_v43 }
 0xb19   : >> { %v4086_v44 = vpop.eup %4085 }
 0xb1a   : >> { %v2212_v46 = vsel %vm1215_vm7, %v4086_v44, 0.0 }
 0xb1b   : >> { %2213 = vadd.xlane.f32.xlu1 %v2212_v46 }
 0xb1d   : >> { %v4088_v47 = vpop.eup %4087 }
 0xb1e   : >> { %v2215_v48 = vsel %vm1215_vm7, %v4088_v47, 0.0 }
 0xb1f   : >> { %2216 = vadd.xlane.f32.xlu0 %v2215_v48 }
 0xb2c   : >> { %4037 = vrot.lane.b32.xlu1 %v4425_v37, %s4154_s25 }
 0xb35   : >> { %2228 = vrot.lane.b32.xlu0 %v4427_v39, %s4154_s25  ;;  %s4704_s25 = scalar_lea.vmem %s4859_s18, %s3401_s30 }
 0xb38   : >> { %v2070_v49 = vpop.f32.mrb[30].mxu1 }
 0xb39   : >> { %v2084_v50 = vadd.f32 %v2070_v49, %v4564_v0  ;;  %v3708_v51 = vpop.f32.mrb[31].mxu1 }
 0xb3c   : >> { %v2075_v52 = vpop.f32.mrb[32].mxu1 }
 0xb3d   : >> { %v2085_v53 = vadd.f32 %v2075_v52, %v4566_v3  ;;  %v3711_v54 = vpop.f32.mrb[33].mxu1 }
 0xb40   : >> { %v2080_v34 = vpop.f32.mrb[34].mxu1 }
 0xb41   : >> { %v2086_v55 = vadd.f32 %v2080_v34, %v4568_v6  ;;  %v3714_v56 = vpop.f32.mrb[35].mxu1 }
 0xba4   : >> { %v2211_v57 = vpop.xlane.xlu0 %2210 }
 0xba5   : >> { %4089 = vrcp.f32 %v2211_v57  ;;  %v2490_v57 = vld [vmem:[%s2489_s3] sm:$0xff] }
 0xba8   : >> { %v2214_v37 = vpop.xlane.xlu1 %2213 }
 0xba9   : >> { %4091 = vrcp.f32 %v2214_v37  ;;  %v2491_v37 = vld [vmem:[%s2489_s3 + $0x8] sm:$0xff] }
 0xbac   : >> { %v4038_v39 = vpop.permute.xlu1 %4037  ;;  %v2217_v60 = vpop.xlane.xlu0 %2216 }
 0xbad   : >> { %v4040_v0 = vunpack.i.h.bf16 %v4038_v39  ;;  %v4039_v61 = vunpack.i.l.bf16 %v4038_v39  ;;  %4093 = vrcp.f32 %v2217_v60  ;;  %v3911_v39 = vpack.c.bf16 %v2491_v37, %v2490_v57  ;;  %v2492_v60 = vld [vmem:[%s2489_s3 + $0x10] sm:$0xff] }
 0xbaf   : >> { %v3908_v62 = vpack.c.bf16 %v4040_v0, %v4039_v61  ;;  %v4090_v3 = vpop.eup %4089  ;;  %v2493_v0 = vld [vmem:[%s2489_s3 + $0x18] sm:$0xff]  ;;  %s2690_s3 = scalar_lea.vmem %s4860_s19, %s4136_s29 }
 0xbb0   : >> { %v2221_v63 = vmul.f32 %v4090_v3, %v4084_v42  ;;  %v2229_v1 = vpop.permute.xlu0 %2228  ;;  %v3914_v61 = vpack.c.bf16 %v2493_v0, %v2492_v60 }
 0xbb1   : >> { %3909 = vmatpush3.bf16.msra.mxu1 %v3908_v62 }
 0xbb2   : >> { %3734 = vmatprep.subr.mxu1 %v4143_v59 }
 0xbb3   : >> { %v4092_v45 = vpop.eup %4091 }
 0xbb4   : >> { %v2222_v6 = vmul.f32 %v4092_v45, %v4086_v44 }
 0xbb5   : >> { %3735 = vmatpush3.msra.mxu1 %v2229_v1 }
 0xbb6   : >> { %3737 = vmatmul.mubr.msk.f32.vlgmr.msra.gmra.mrb[36].mxu1 %vm1215_vm7, %v2221_v63  ;;  %3910 = vmatprep.subr.bf16.mxu1 %v4141_v58 }
 0xbb7   : >> { %3739 = vmatprep.mubr.msk.f32.mxu1 %vm4142_vm4, %v4143_v59  ;;  %v4094_v2 = vpop.eup %4093  ;;  %3912 = vmatpush3.bf16.msra.mxu1 %v3911_v39 }
 0xbb8   : >> { %v2223_v4 = vmul.f32 %v4094_v2, %v4088_v47  ;;  %3913 = vmatprep.subr.bf16.mxu1 %v4141_v58 }
 0xbba   : >> { %3740 = vmatmul.mubr.msk.f32.gmra.mrb[38].mxu1 %vm1215_vm7, %v2222_v6 }
 0xbbb   : >> { %3742 = vmatprep.mubr.msk.f32.mxu1 %vm4142_vm4, %v4143_v59  ;;  %3915 = vmatpush3.bf16.msra.mxu1 %v3914_v61 }
 0xbbe   : >> { %3743 = vmatmul.mubr.msk.f32.gmra.mrb[40].mxu1 %vm1215_vm7, %v2223_v4 }
 0xbbf   : >> { %3764 = vmatprep.mubr.msk.f32.mxu1 %vm4142_vm4, %v4143_v59 }
 0xc89   : >> { %v2308_v5 = vpop.f32.mrb[36].mxu1 }
 0xc8a   : >> { %v3738_v7 = vpop.f32.mrb[37].mxu1  ;;  %3748 = vmatmul.mubr.msk.f32.vlgmr.msra.gmra.mrb[30].mxu0 %vm1122_vm5, %v2308_v5 }
 0xc8b   : >> { %3750 = vmatprep.mubr.msk.f32.mxu0 %vm4142_vm4, %v4143_v59 }
 0xc8d   : >> { %v2313_v8 = vpop.f32.mrb[38].mxu1 }
 0xc8e   : >> { %v3741_v9 = vpop.f32.mrb[39].mxu1  ;;  %3751 = vmatmul.mubr.msk.f32.gmra.mrb[32].mxu0 %vm1122_vm5, %v2313_v8  ;;  %v3395_v8 = vld [vmem:[%s2428_s4] ss:$0 sm:$0xff]  ;;  %s4888_s4 = sld [smem:[#allocation9_spill]] (!%p3403_p4) }
 0xc8f   : >> { %3753 = vmatprep.mubr.msk.f32.mxu0 %vm4142_vm4, %v4143_v59 }
 0xc91   : >> { %v2318_v10 = vpop.f32.mrb[40].mxu1 }
 0xc92   : >> { %v3744_v13 = vpop.f32.mrb[41].mxu1  ;;  %3754 = vmatmul.mubr.msk.f32.gmra.mrb[34].mxu0 %vm1122_vm5, %v2318_v10  ;;  %v3396_v10 = vld [vmem:[%s2430_s0] ss:$0 sm:$0xff] }
 0xc93   : >> { %3805 = vmatprep.mubr.msk.f32.mxu0 %vm4142_vm4, %v4143_v59 }
 0xd5d   : >> { %v2397_v14 = vpop.f32.mrb[30].mxu0 }
 0xd5e   : >> { %v2411_v15 = vadd.f32 %v2397_v14, %v2084_v50  ;;  %v3749_v16 = vpop.f32.mrb[31].mxu0 }
 0xd60   : >> { %v2414_v19 = vadd.f32 %v4113_v18, %v2411_v15 }
 0xd61   : >> { %v2402_v20 = vpop.f32.mrb[32].mxu0 }
 0xd62   : >> { %v4662_v21 = vadd.f32 %v3394_v17, %v2414_v19  ;;  %v2412_v25 = vadd.f32 %v2402_v20, %v2085_v53  ;;  %v3752_v26 = vpop.f32.mrb[33].mxu0 }
 0xd64   : >> { %v2415_v28 = vadd.f32 %v4114_v27, %v2412_v25  ;;  %v2432_v29 = vsel %vm927_vm3, %v4662_v21, 0.0  ;;  %v2674_v27 = vld [vmem:[%s4704_s25] sm:$0xff] }
 0xd65   : >> { %2433 = vadd.xlane.f32.xlu1 %v2432_v29  ;;  %v2407_v30 = vpop.f32.mrb[34].mxu0 }
 0xd66   : >> { %v4666_v31 = vadd.f32 %v3394_v17, %v2415_v28  ;;  %v2413_v32 = vadd.f32 %v2407_v30, %v2086_v55  ;;  %v3755_v33 = vpop.f32.mrb[35].mxu0  ;;  %v2675_v28 = vld [vmem:[%s4704_s25 + $0x8] sm:$0xff]  ;;  %v2676_v30 = vld [vmem:[%s4704_s25 + $0x10] sm:$0xff] }
 0xd67   : >> { %v3917_v29 = vpack.c.bf16 %v2675_v28, %v2674_v27 }
 0xd68   : >> { %v2416_v38 = vadd.f32 %v4115_v36, %v2413_v32  ;;  %v2435_v40 = vsel %vm927_vm3, %v4666_v31, 0.0  ;;  %v2677_v32 = vld [vmem:[%s4704_s25 + $0x18] sm:$0xff]  ;;  %v2678_v36 = vld [vmem:[%s4704_s25 + $0x20] sm:$0xff] }
 0xd69   : >> { %2436 = vadd.xlane.f32.xlu0 %v2435_v40  ;;  %3918 = vmatpush3.bf16.msra.mxu0 %v3917_v29  ;;  %v3920_v33 = vpack.c.bf16 %v2677_v32, %v2676_v30 }
 0xd6a   : >> { %v4670_v41 = vadd.f32 %v3394_v17, %v2416_v38  ;;  %3919 = vmatprep.subr.bf16.mxu0 %v4141_v58  ;;  %v2679_v38 = vld [vmem:[%s4704_s25 + $0x28] sm:$0xff] }
 0xd6b   : >> { %v3923_v40 = vpack.c.bf16 %v2679_v38, %v2678_v36 }
 0xd6c   : >> { %v2438_v42 = vsel %vm927_vm3, %v4670_v41, 0.0 }
 0xd6d   : >> { %2439 = vadd.xlane.f32.xlu1 %v2438_v42  ;;  %3921 = vmatpush3.bf16.msra.mxu0 %v3920_v33  ;;  %v2680_v42 = vld [vmem:[%s4704_s25 + $0x30] sm:$0xff] }
 0xd6e   : >> { %3922 = vmatprep.subr.bf16.mxu0 %v4141_v58 }
 0xd71   : >> { %3924 = vmatpush3.bf16.msra.mxu0 %v3923_v40 }
 0xd72   : >> { %3925 = vmatprep.subr.bf16.mxu0 %v4141_v58 }
 0xdf2   : >> { %v2434_v43 = vpop.xlane.xlu1 %2433 }
 0xdf3   : >> { %v2441_v44 = vmul.f32 0.03125, %v2434_v43  ;;  %v2681_v43 = vld [vmem:[%s4704_s25 + $0x38] sm:$0xff] }
 0xdf5   : >> { %v2444_v46 = vsub.f32 %v4662_v21, %v2441_v44  ;;  %v3926_v44 = vpack.c.bf16 %v2681_v43, %v2680_v42 }
 0xdf6   : >> { %v2437_v47 = vpop.xlane.xlu0 %2436 }
 0xdf7   : >> { %v2442_v48 = vmul.f32 0.03125, %v2437_v47  ;;  %v2447_v49 = vmul.f32 %v2444_v46, %v2444_v46  ;;  %3927 = vmatpush3.bf16.msra.mxu0 %v3926_v44  ;;  %v2683_v47 = vld [vmem:[%s4704_s25 + $0x48] sm:$0xff] }
 0xdf8   : >> { %3928 = vmatprep.subr.bf16.mxu0 %v4141_v58 }
 0xdf9   : >> { %v2445_v50 = vsub.f32 %v4666_v31, %v2442_v48  ;;  %v2450_v51 = vsel %vm927_vm3, %v2447_v49, 0.0  ;;  %v2684_v49 = vld [vmem:[%s4704_s25 + $0x50] sm:$0xff] }
 0xdfa   : >> { %2451 = vadd.xlane.f32.xlu0 %v2450_v51  ;;  %v2440_v52 = vpop.xlane.xlu1 %2439 }
 0xdfb   : >> { %v2443_v53 = vmul.f32 0.03125, %v2440_v52  ;;  %v2448_v54 = vmul.f32 %v2445_v50, %v2445_v50  ;;  %v2686_v52 = vld [vmem:[%s4704_s25 + $0x60] sm:$0xff] }
 0xdfd   : >> { %v2446_v35 = vsub.f32 %v4670_v41, %v2443_v53  ;;  %v2453_v34 = vsel %vm927_vm3, %v2448_v54, 0.0  ;;  %v2687_v53 = vld [vmem:[%s4704_s25 + $0x68] sm:$0xff] }
 0xdfe   : >> { %2454 = vadd.xlane.f32.xlu1 %v2453_v34  ;;  %v3935_v54 = vpack.c.bf16 %v2687_v53, %v2686_v52  ;;  %v2689_v34 = vld [vmem:[%s4704_s25 + $0x78] sm:$0xff] }
 0xdff   : >> { %v2449_v55 = vmul.f32 %v2446_v35, %v2446_v35 }
 0xe01   : >> { %v2456_v56 = vsel %vm927_vm3, %v2449_v55, 0.0 }
 0xe02   : >> { %2457 = vadd.xlane.f32.xlu0 %v2456_v56  ;;  %v3397_v56 = vld [vmem:[%s2494_s2] ss:$0 sm:$0xff] }
 0xe87   : >> { %v2452_v62 = vpop.xlane.xlu0 %2451 }
 0xe88   : >> { %v2459_v3 = vmul.f32 0.03125, %v2452_v62 }
 0xe8a   : >> { %v2462_v63 = vadd.f32 1e-06, %v2459_v3 }
 0xe8b   : >> { %v2455_v1 = vpop.xlane.xlu1 %2454 }
 0xe8c   : >> { %4095 = vrsqrt.f32 %v2462_v63  ;;  %v2460_v45 = vmul.f32 0.03125, %v2455_v1 }
 0xe8e   : >> { %v2463_v6 = vadd.f32 1e-06, %v2460_v45 }
 0xe8f   : >> { %v2458_v2 = vpop.xlane.xlu0 %2457 }
 0xe90   : >> { %4097 = vrsqrt.f32 %v2463_v6  ;;  %v2461_v4 = vmul.f32 0.03125, %v2458_v2 }
 0xe92   : >> { %v2464_v5 = vadd.f32 1e-06, %v2461_v4 }
 0xe94   : >> { %4099 = vrsqrt.f32 %v2464_v5 }
 0xe96   : >> { %v4096_v7 = vpop.eup %4095 }
 0xe97   : >> { %v2468_v9 = vmul.f32 %v4096_v7, %v2444_v46  ;;  %v2682_v46 = vld [vmem:[%s4704_s25 + $0x40] sm:$0xff] }
 0xe98   : >> { %v3929_v48 = vpack.c.bf16 %v2683_v47, %v2682_v46 }
 0xe99   : >> { %v2477_v13 = vmul.f32 %v3395_v8, %v2468_v9 }
 0xe9a   : >> { %v4098_v14 = vpop.eup %4097  ;;  %3930 = vmatpush3.bf16.msra.mxu0 %v3929_v48 }
 0xe9b   : >> { %v2486_v15 = vadd.f32 %v3396_v10, %v2477_v13  ;;  %v2469_v16 = vmul.f32 %v4098_v14, %v2445_v50  ;;  %3931 = vmatprep.subr.bf16.mxu0 %v4141_v58  ;;  %v2685_v50 = vld [vmem:[%s4704_s25 + $0x58] sm:$0xff] }
 0xe9c   : >> { %v3932_v51 = vpack.c.bf16 %v2685_v50, %v2684_v49 }
 0xe9d   : >> { %3765 = vmatmul.mubr.msk.f32.vlgmr.msra.gmra.mrb[42].mxu1 %vm927_vm3, %v2486_v15  ;;  %v2478_v17 = vmul.f32 %v3395_v8, %v2469_v16 }
 0xe9e   : >> { %v4100_v18 = vpop.eup %4099  ;;  %3767 = vmatprep.mubr.msk.f32.mxu1 %vm4142_vm4, %v4143_v59  ;;  %3933 = vmatpush3.bf16.msra.mxu0 %v3932_v51 }
 0xe9f   : >> { %v2487_v19 = vadd.f32 %v3396_v10, %v2478_v17  ;;  %v2470_v20 = vmul.f32 %v4100_v18, %v2446_v35  ;;  %3934 = vmatprep.subr.bf16.mxu0 %v4141_v58  ;;  %v2688_v35 = vld [vmem:[%s4704_s25 + $0x70] sm:$0xff] }
 0xea0   : >> { %v3938_v55 = vpack.c.bf16 %v2689_v34, %v2688_v35 }
 0xea1   : >> { %3768 = vmatmul.mubr.msk.f32.gmra.mrb[44].mxu1 %vm927_vm3, %v2487_v19  ;;  %v2479_v25 = vmul.f32 %v3395_v8, %v2470_v20 }
 0xea2   : >> { %3770 = vmatprep.mubr.msk.f32.mxu1 %vm4142_vm4, %v4143_v59  ;;  %3936 = vmatpush3.bf16.msra.mxu0 %v3935_v54 }
 0xea3   : >> { %v2488_v26 = vadd.f32 %v3396_v10, %v2479_v25  ;;  %3937 = vmatprep.subr.bf16.mxu0 %v4141_v58 }
 0xea5   : >> { %3771 = vmatmul.mubr.msk.f32.gmra.mrb[46].mxu1 %vm927_vm3, %v2488_v26 }
 0xea6   : >> { %3939 = vmatpush3.bf16.msra.mxu0 %v3938_v55 }
 0xf70   : >> { %v2577_v57 = vpop.f32.mrb[42].mxu1 }
 0xf71   : >> { %v4733_v37 = vadd.f32 %v3397_v56, %v2577_v57  ;;  %v3766_v39 = vpop.f32.mrb[43].mxu1 }
 0xf73   : >> { %v4736_v60 = vmul.f32 0.70710677, %v4733_v37 }
 0xf74   : >> { %v2582_v0 = vpop.f32.mrb[44].mxu1 }
 0xf75   : >> { %v2603_v61 = vand.u32 2147483647, %v4736_v60  ;;  %v4739_v58 = vadd.f32 %v3397_v56, %v2582_v0  ;;  %v3769_v62 = vpop.f32.mrb[45].mxu1  ;;  %vm2597_vm8 = vcmp.ge.f32.partialorder %v4736_v60, 0.0 }
 0xf77   : >> { %v2606_v3 = vmul.f32 0.3275911, %v2603_v61  ;;  %v4742_v63 = vmul.f32 0.70710677, %v4739_v58  ;;  %v2645_v13 = vsub.f32 0.0, %v2603_v61 }
 0xf78   : >> { %v2587_v1 = vpop.f32.mrb[46].mxu1 }
 0xf79   : >> { %v2609_v45 = vadd.f32 1.0, %v2606_v3  ;;  %v2604_v6 = vand.u32 2147483647, %v4742_v63  ;;  %v3772_v2 = vpop.f32.mrb[47].mxu1  ;;  %v4745_v4 = vadd.f32 %v3397_v56, %v2587_v1  ;;  %v2648_v16 = vmul.f32 %v2645_v13, %v2603_v61 }
 0xf7a   : >> { %v4155_v1 = vmov -1.0   ;;  %vm2598_vm9 = vcmp.ge.f32.partialorder %v4742_v63, 0.0 }
 0xf7b   : >> { %4101 = vrcp.f32 %v2609_v45  ;;  %v2607_v5 = vmul.f32 0.3275911, %v2604_v6  ;;  %v4748_v7 = vmul.f32 0.70710677, %v4745_v4  ;;  %v2646_v17 = vsub.f32 0.0, %v2604_v6 }
 0xf7c   : >> { %v2651_v25 = vmul.f32 1.442695, %v2648_v16  ;;  %v2600_v45 = vsel %vm2597_vm8, 1.0, %v4155_v1 }
 0xf7d   : >> { %v2610_v8 = vadd.f32 1.0, %v2607_v5  ;;  %v2605_v9 = vand.u32 2147483647, %v4748_v7  ;;  %v2649_v26 = vmul.f32 %v2646_v17, %v2604_v6  ;;  %vm2599_vm10 = vcmp.ge.f32.partialorder %v4748_v7, 0.0 }
 0xf7f   : >> { %4103 = vrcp.f32 %v2610_v8  ;;  %v2608_v10 = vmul.f32 0.3275911, %v2605_v9  ;;  %v2647_v28 = vsub.f32 0.0, %v2605_v9  ;;  %v2653_v33 = vmul.f32 1.442695, %v2649_v26 }
 0xf81   : >> { %v2611_v14 = vadd.f32 1.0, %v2608_v10  ;;  %v2650_v40 = vmul.f32 %v2647_v28, %v2605_v9  ;;  %v2591_v9 = vmul.f32 0.5, %v4733_v37  ;;  %v2602_v37 = vsel %vm2599_vm10, 1.0, %v4155_v1 }
 0xf83   : >> { %4105 = vrcp.f32 %v2611_v14  ;;  %v2655_v49 = vmul.f32 1.442695, %v2650_v40  ;;  %v2601_v14 = vsel %vm2598_vm9, 1.0, %v4155_v1 }
 0xf84   : >> { %4107 = vpow2.f32 %v2651_v25 }
 0xf85   : >> { %v4102_v15 = vpop.eup %4101  ;;  %4109 = vpow2.f32 %v2653_v33 }
 0xf86   : >> { %v2618_v18 = vmul.f32 1.0614054, %v4102_v15  ;;  %4111 = vpow2.f32 %v2655_v49 }
 0xf88   : >> { %v2621_v19 = vadd.f32 -1.4531521, %v2618_v18 }
 0xf89   : >> { %v4104_v20 = vpop.eup %4103 }
 0xf8a   : >> { %v2624_v27 = vmul.f32 %v4102_v15, %v2621_v19  ;;  %v2619_v29 = vmul.f32 1.0614054, %v4104_v20  ;;  %v2592_v19 = vmul.f32 0.5, %v4739_v58  ;;  %v3402_v58 = vld [vmem:[%s2690_s3] ss:$0 sm:$0xff] }
 0xf8c   : >> { %v2627_v30 = vadd.f32 1.4214138, %v2624_v27  ;;  %v2622_v32 = vadd.f32 -1.4531521, %v2619_v29  ;;  %v2593_v27 = vmul.f32 0.5, %v4745_v4 }
 0xf8d   : >> { %v4106_v36 = vpop.eup %4105 }
 0xf8e   : >> { %v2630_v38 = vmul.f32 %v4102_v15, %v2627_v30  ;;  %v2625_v42 = vmul.f32 %v4104_v20, %v2622_v32  ;;  %v2620_v43 = vmul.f32 1.0614054, %v4106_v36  ;;  %v4108_v55 = vpop.eup %4107 }
 0xf8f   : >> { %v4110_v3 = vpop.eup %4109 }
 0xf90   : >> { %v2633_v44 = vadd.f32 -0.28449672, %v2630_v38  ;;  %v2628_v46 = vadd.f32 1.4214138, %v2625_v42  ;;  %v2623_v47 = vadd.f32 -1.4531521, %v2620_v43 }
 0xf92   : >> { %v2636_v48 = vmul.f32 %v4102_v15, %v2633_v44  ;;  %v2631_v50 = vmul.f32 %v4104_v20, %v2628_v46  ;;  %v2626_v51 = vmul.f32 %v4106_v36, %v2623_v47  ;;  %v4156_v46 = vmov (!%p3403_p4), 0.0|0.0  }
 0xf93   : >> { %3940 = vmatprep.subr.bf16.mxu0 (!%p3403_p4), %v4156_v46  ;;  %v4158_v47 = vmov (!%p3403_p4), 0.0  }
 0xf94   : >> { %v2639_v52 = vadd.f32 0.2548296, %v2636_v48  ;;  %v2634_v53 = vadd.f32 -0.28449672, %v2631_v50  ;;  %v2629_v54 = vadd.f32 1.4214138, %v2626_v51 }
 0xf96   : >> { %v2642_v35 = vmul.f32 %v4102_v15, %v2639_v52  ;;  %v2637_v34 = vmul.f32 %v4104_v20, %v2634_v53  ;;  %v2632_v56 = vmul.f32 %v4106_v36, %v2629_v54  ;;  %v4112_v15 = vpop.eup %4111 }
 0xf98   : >> { %v2657_v57 = vmul.f32 %v4108_v55, %v2642_v35  ;;  %v2640_v39 = vadd.f32 0.2548296, %v2637_v34  ;;  %v2635_v0 = vadd.f32 -0.28449672, %v2632_v56 }
 0xf9a   : >> { %v2660_v61 = vsub.f32 1.0, %v2657_v57  ;;  %v2643_v62 = vmul.f32 %v4104_v20, %v2640_v39  ;;  %v2638_v6 = vmul.f32 %v4106_v36, %v2635_v0 }
 0xf9c   : >> { %v2663_v2 = vmul.f32 %v2660_v61, %v2600_v45  ;;  %v2658_v5 = vmul.f32 %v4110_v3, %v2643_v62  ;;  %v2641_v8 = vadd.f32 0.2548296, %v2638_v6 }
 0xf9e   : >> { %v2666_v10 = vadd.f32 1.0, %v2663_v2  ;;  %v2661_v13 = vsub.f32 1.0, %v2658_v5  ;;  %v2644_v60 = vmul.f32 %v4106_v36, %v2641_v8 }
 0xfa0   : >> { %v2669_v16 = vmul.f32 %v2666_v10, %v2591_v9  ;;  %v2664_v17 = vmul.f32 %v2661_v13, %v2601_v14  ;;  %v2659_v18 = vmul.f32 %v4112_v15, %v2644_v60 }
 0xfa2   : >> { %3806 = vmatmul.mubr.f32.vlgmr.msra.gmra.mrb[36].mxu0 %v2669_v16  ;;  %v2667_v20 = vadd.f32 1.0, %v2664_v17  ;;  %v2662_v63 = vsub.f32 1.0, %v2659_v18 }
 0xfa3   : >> { %3808 = vmatprep.mubr.msk.f32.mxu0 %vm4142_vm4, %v4143_v59 }
 0xfa4   : >> { %v2670_v25 = vmul.f32 %v2667_v20, %v2592_v19  ;;  %v2665_v26 = vmul.f32 %v2662_v63, %v2602_v37 }
 0xfa6   : >> { %3809 = vmatmul.mubr.f32.gmra.mrb[38].mxu0 %v2670_v25  ;;  %v2668_v7 = vadd.f32 1.0, %v2665_v26 }
 0xfa7   : >> { %3811 = vmatprep.mubr.msk.f32.mxu0 %vm4142_vm4, %v4143_v59 }
 0xfa8   : >> { %v2671_v28 = vmul.f32 %v2668_v7, %v2593_v27 }
 0xfaa   : >> { %3812 = vmatmul.mubr.f32.gmra.mrb[40].mxu0 %v2671_v28 }
 0xfab   : >> { %3820 = vmatprep.mubr.msk.f32.mxu0 (!%p3403_p4), %vm4157_vm11, %v4158_v47 }
0x1075   : >> { %v2764_v29 = vpop.f32.mrb[36].mxu0 }
0x1076   : >> { %v2765_v30 = vadd.f32 %v3402_v58, %v2764_v29  ;;  %v3807_v32 = vpop.f32.mrb[37].mxu0 }
0x1078   : >> { %v2778_v33 = vadd.f32 %v2765_v30, %v4662_v21 }
0x1079   : >> { %v2769_v36 = vpop.f32.mrb[38].mxu0 }
0x107a   : >> { %2781 = vst.msk [vmem:[#allocation2] sm:$0xff] %vm927_vm3, %v2778_v33  ;;  %v2770_v4 = vadd.f32 %v3402_v58, %v2769_v36  ;;  %v3810_v38 = vpop.f32.mrb[39].mxu0 }
0x107c   : >> { %v2779_v59 = vadd.f32 %v2770_v4, %v4666_v31  ;;  %2787 = sbr.rel (%p3403_p4) target bundleno = 4442 (0x115a), region = 127  ;;  %v2788_v31 = vld [vmem:[%s4888_s4] sm:$0x1] (!%p3403_p4) }
0x107d   : >> { %v2774_v40 = vpop.f32.mrb[40].mxu0 }
0x107e   : >> { %2782 = vst.msk [vmem:[#allocation2 + $0x8] sm:$0xff] %vm927_vm3, %v2779_v59  ;;  %v2775_v42 = vadd.f32 %v3402_v58, %v2774_v40  ;;  %v3813_v43 = vpop.f32.mrb[41].mxu0  ;;  %v3941_v21 = vpack.c.bf16 (!%p3403_p4), %v2779_v59, %v2778_v33 }
0x1080   : >> { %v2780_v44 = vadd.f32 %v2775_v42, %v4670_v41  ;;  %3942 = vmatpush3.bf16.msra.mxu0 (!%p3403_p4), %v3941_v21 }
0x1081   : >> { %3818 = vmatprep.subr.mxu0 (!%p3403_p4), %v4158_v47 }
0x1082   : >> { %2783 = vst.msk [vmem:[#allocation2 + $0x10] sm:$0xff] %vm927_vm3, %v2780_v44 }
0x1084   : >> { %3819 = vmatpush3.msra.mxu0 %v2780_v44 }
0x1085   : >> { %3821 = vmatmul.mubr.msk.f32.vlgmr.msra.gmra.mrb[0].mxu0 %vm1215_vm7, %v2788_v31 }
0x1158   : >> { %v2858_v41 = vpop.f32.mrb[0].mxu0 }
0x1159   : >> { %2863 = vst.msk [vmem:[#allocation3] sm:$0x1] %vm2862_vm12, %v2858_v41  ;;  %v3822_v48 = vpop.f32.mrb[1].mxu0 }
0x115a PF: >> { %p3405_p5 = scmp.ne.s32.totalorder %s4136_s29, 7 }
0x115b   : >> { %v3944_v49 = vpack.c.bf16 (!%p3405_p5), %v2779_v59, %v2778_v33  ;;  %v4159_v50 = vmov (!%p3405_p5), 0.0|0.0   ;;  %vm4160_vm13 = vmmov (!%p3405_p5), 0   ;;  %v4161_v51 = vmov (!%p3405_p5), 0.0   ;;  %s4889_s0 = sld [smem:[#allocation9_spill]] (!%p3405_p5) }
0x115c   : >> { %2867 = sbr.rel (%p3405_p5) target bundleno = 4663 (0x1237), region = 131  ;;  %3943 = vmatprep.subr.bf16.mxu0 (!%p3405_p5), %v4159_v50  ;;  %3829 = vmatprep.mubr.msk.f32.mxu0 (!%p3405_p5), %vm4160_vm13, %v4161_v51  ;;  %vm2942_vm14 = vcmask (!%p3405_p5), 253952  }
0x115d   : >> { %3945 = vmatpush3.bf16.msra.mxu0 (!%p3405_p5), %v3944_v49 }
0x115e   : >> { %3827 = vmatprep.subr.mxu0 (!%p3405_p5), %v4161_v51 }
0x1161   : >> { %v2868_v52 = vld [vmem:[%s4889_s0] sm:$0x1] (!%p3405_p5)  ;;  %3828 = vmatpush3.msra.mxu0 (!%p3405_p5), %v2780_v44 }
0x1162   : >> { %3830 = vmatmul.mubr.msk.f32.vlgmr.msra.gmra.mrb[0].mxu0 (!%p3405_p5), %vm1215_vm7, %v2868_v52 }
0x1235   : >> { %v2938_v53 = vpop.f32.mrb[0].mxu0 }
0x1236   : >> { %2943 = vst.msk [vmem:[#allocation4] sm:$0x1] %vm2942_vm14, %v2938_v53  ;;  %v3831_v54 = vpop.f32.mrb[1].mxu0 }
0x1237 PF: >> { %s939_s29 = sadd.s32 1, %s4136_s29  }
0x1238   : >> { %p936_p6 = scmp.ge.s32.totalorder %s939_s29, 8  }
0x1239   : > { %v2944_v35 = vld [vmem:[#allocation2] sm:$0xff] (%p936_p6)  ;;  %v2946_v34 = vld [vmem:[#allocation2 + $0x10] sm:$0xff] (%p936_p6)  ;;  %v2945_v55 = vld [vmem:[#allocation2 + $0x8] sm:$0xff] (%p936_p6)  ;;  %3946 = vmatprep.subr.bf16.mxu1 (%p936_p6), %v4138_v11  ;;  %3838 = vmatprep.mubr.msk.f32.mxu1 (%p936_p6), %vm4139_vm1, %v4140_v12  ;;  %s4890_s27 = sld [smem:[#allocation9_spill]] (%p936_p6)  ;;  %s4891_s29 = sld [smem:[#allocation10_spill]] (%p936_p6)  ;;  %vm3253_vm15 = vcmask (%p936_p6), 523264  }
0x123a   : > { %938 = sbr.rel (!%p936_p6) target bundleno = 478 (0x1de), region = 173  ;;  %v2949_v56 = vsel (%p936_p6), %vm927_vm3, %v2944_v35, 0.0  ;;  %v2955_v57 = vsel (%p936_p6), %vm927_vm3, %v2946_v34, 0.0  ;;  %3952 = vmatprep.subr.bf16.mxu0 (%p936_p6), %v4138_v11  ;;  %3858 = vmatprep.mubr.msk.f32.mxu0 (%p936_p6), %vm4139_vm1, %v4140_v12  ;;  %v2952_v22 = vsel (%p936_p6), %vm927_vm3, %v2945_v55, 0.0  ;;  %v3407_v25 = vld [vmem:[%s4861_s20] ss:$0 sm:$0xff] (%p936_p6)  ;;  %s4892_s2 = scalar_lea.vmem (%p936_p6), %s4865_s24, %s4894_s26 }
0x123b   : > { %2950 = vadd.xlane.f32.xlu0 (%p936_p6), %v2949_v56  ;;  %2956 = vadd.xlane.f32.xlu1 (%p936_p6), %v2955_v57  ;;  %v3408_v58 = vld [vmem:[%s4862_s21] ss:$0 sm:$0xff] (%p936_p6)  ;;  %v3157_v43 = vld [vmem:[%s4863_s22 + $0x8] sm:$0xff] (%p936_p6)  ;;  %s4162_s4 = smov (%p936_p6), 32   ;;  %v3159_v46 = vld [vmem:[%s4863_s22 + $0x18] sm:$0xff] (%p936_p6)  ;;  %s4163_s30 = smov (%p936_p6), 64  }
0x123c   : > { %v3156_v42 = vld [vmem:[%s4863_s22] sm:$0xff] (%p936_p6)  ;;  %s4164_s25 = smov (%p936_p6), 96   ;;  %v3234_v53 = vld [vmem:[#allocation3] sm:$0x1] (%p936_p6)  ;;  %vm3255_vm0 = vcmask (%p936_p6), 785408  }
0x123d   : > { %v3953_v44 = vpack.c.bf16 (%p936_p6), %v3157_v43, %v3156_v42  ;;  %v3412_v21 = vld [vmem:[#allocation4] ss:$0 sm:$0xff] (%p936_p6) }
0x123f   : > { %2953 = vadd.xlane.f32.xlu0 (%p936_p6), %v2952_v22  ;;  %v3007_v59 = vld [vmem:[%s4890_s27] sm:$0x1] (%p936_p6)  ;;  %3954 = vmatpush3.bf16.msra.mxu0 (%p936_p6), %v3953_v44 }
0x1240   : > { %v3082_v40 = vld [vmem:[%s4891_s29] sm:$0x1] (%p936_p6)  ;;  %3955 = vmatprep.subr.bf16.mxu0 (%p936_p6), %v4138_v11 }
0x12c8   : > { %v2951_v23 = vpop.xlane.xlu0 %2950  ;;  %v2957_v24 = vpop.xlane.xlu1 %2956 }
0x12c9   : > { %v2959_v39 = vmul.f32 0.03125, %v2951_v23  ;;  %v2961_v0 = vmul.f32 0.03125, %v2957_v24 }
0x12cb   : > { %v2962_v61 = vsub.f32 %v2944_v35, %v2959_v39  ;;  %v2964_v62 = vsub.f32 %v2946_v34, %v2961_v0 }
0x12cc   : > { %v2954_v3 = vpop.xlane.xlu0 %2953 }
0x12cd   : > { %v2960_v1 = vmul.f32 0.03125, %v2954_v3  ;;  %v2965_v45 = vmul.f32 %v2962_v61, %v2962_v61  ;;  %v2967_v6 = vmul.f32 %v2964_v62, %v2964_v62 }
0x12cf   : > { %v2963_v2 = vsub.f32 %v2945_v55, %v2960_v1  ;;  %v2968_v5 = vsel %vm927_vm3, %v2965_v45, 0.0  ;;  %v2974_v8 = vsel %vm927_vm3, %v2967_v6, 0.0 }
0x12d0   : > { %2969 = vadd.xlane.f32.xlu1 %v2968_v5 }
0x12d1   : > { %v2966_v9 = vmul.f32 %v2963_v2, %v2963_v2 }
0x12d3   : > { %v2971_v10 = vsel %vm927_vm3, %v2966_v9, 0.0 }
0x12d4   : > { %2975 = vadd.xlane.f32.xlu1 %v2974_v8  ;;  %2972 = vadd.xlane.f32.xlu0 %v2971_v10 }
0x12ea   : > { %3241 = vrot.lane.b32.xlu0 %v3412_v21, %s4162_s4 }
0x135d   : > { %v2970_v13 = vpop.xlane.xlu1 %2969 }
0x135e   : > { %v2977_v14 = vmul.f32 0.03125, %v2970_v13 }
0x1360   : > { %v2980_v60 = vadd.f32 1e-06, %v2977_v14 }
0x1361   : > { %v2976_v15 = vpop.xlane.xlu1 %2975  ;;  %v2973_v16 = vpop.xlane.xlu0 %2972 }
0x1362   : > { %4116 = vrsqrt.f32 %v2980_v60  ;;  %v2979_v17 = vmul.f32 0.03125, %v2976_v15  ;;  %v2978_v18 = vmul.f32 0.03125, %v2973_v16 }
0x1364   : > { %v2982_v19 = vadd.f32 1e-06, %v2979_v17  ;;  %v2981_v20 = vadd.f32 1e-06, %v2978_v18 }
0x1365   : > { %v3242_v54 = vpop.permute.xlu0 %3241 }
0x1366   : > { %4118 = vrsqrt.f32 %v2982_v19  ;;  %v3252_v34 = vsel %vm927_vm3, %v3234_v53, %v3242_v54 }
0x1367   : > { %4120 = vrsqrt.f32 %v2981_v20 }
0x136c   : > { %v4117_v63 = vpop.eup %4116 }
0x136d   : > { %v2986_v37 = vmul.f32 %v4117_v63, %v2962_v61 }
0x136f   : > { %v2995_v28 = vmul.f32 %v3407_v25, %v2986_v37 }
0x1370   : > { %v4119_v26 = vpop.eup %4118 }
0x1371   : > { %v4121_v27 = vpop.eup %4120  ;;  %v2988_v30 = vmul.f32 %v4119_v26, %v2964_v62  ;;  %v3004_v32 = vadd.f32 %v3408_v58, %v2995_v28 }
0x1372   : > { %v2987_v7 = vmul.f32 %v4121_v27, %v2963_v2 }
0x1373   : > { %v2997_v4 = vmul.f32 %v3407_v25, %v2988_v30 }
0x1374   : > { %v2996_v29 = vmul.f32 %v3407_v25, %v2987_v7 }
0x1375   : > { %v3006_v38 = vadd.f32 %v3408_v58, %v2997_v4 }
0x1376   : > { %v3005_v33 = vadd.f32 %v3408_v58, %v2996_v29 }
0x1378   : > { %v3947_v36 = vpack.c.bf16 %v3005_v33, %v3004_v32 }
0x137a   : > { %3948 = vmatpush3.bf16.msra.mxu1 %v3947_v36 }
0x137b   : > { %3836 = vmatprep.subr.mxu1 %v4140_v12 }
0x137e   : > { %3837 = vmatpush3.msra.mxu1 %v3006_v38 }
0x137f   : > { %3839 = vmatmul.mubr.msk.f32.vlgmr.msra.gmra.mrb[0].mxu1 %vm1215_vm7, %v3007_v59  ;;  %3949 = vmatprep.subr.bf16.mxu1 %v4138_v11  ;;  %v3160_v11 = vld [vmem:[%s4864_s23] sm:$0x1] }
0x1380   : > { %3951 = vmatpush3.bf16.msra.mxu1 %v3947_v36  ;;  %3847 = vmatprep.mubr.msk.f32.mxu1 %vm4139_vm1, %v4140_v12 }
0x1381   : > { %3845 = vmatprep.subr.mxu1 %v4140_v12  ;;  %v3158_v12 = vld [vmem:[%s4863_s22 + $0x10] sm:$0xff] }
0x1382   : > { %v3956_v47 = vpack.c.bf16 %v3159_v46, %v3158_v12 }
0x1384   : > { %3846 = vmatpush3.msra.mxu1 %v3006_v38  ;;  %3957 = vmatpush3.bf16.msra.mxu0 %v3956_v47 }
0x1385   : > { %3848 = vmatmul.mubr.msk.f32.vlgmr.msra.gmra.mrb[2].mxu1 %vm1215_vm7, %v3082_v40 }
0x1452   : > { %v3078_v31 = vpop.f32.mrb[0].mxu1 }
0x1453   : > { %v3840_v41 = vpop.f32.mrb[1].mxu1  ;;  %3245 = vrot.lane.b32.xlu1 %v3078_v31, %s4163_s30 }
0x1458   : > { %v3152_v48 = vpop.f32.mrb[2].mxu1 }
0x1459   : > { %v3849_v49 = vpop.f32.mrb[3].mxu1  ;;  %3859 = vmatmul.mubr.msk.f32.vlgmr.msra.gmra.mrb[0].mxu0 %vm927_vm3, %v3152_v48 }
0x14c5   : > { %v3246_v35 = vpop.permute.xlu1 %3245 }
0x14c6   : > { %v3254_v55 = vsel %vm3253_vm15, %v3252_v34, %v3246_v35 }
0x152c   : > { %v3230_v50 = vpop.f32.mrb[0].mxu0 }
0x152d   : > { %v3231_v51 = vadd.f32 %v3230_v50, %v3160_v11  ;;  %v3860_v52 = vpop.f32.mrb[1].mxu0 }
0x152f   : > { %3249 = vrot.lane.b32.xlu1 %v3231_v51, %s4164_s25 }
0x15a1   : > { %v3250_v56 = vpop.permute.xlu1 %3249 }
0x15a2   : > { %v3256_v57 = vsel %vm3255_vm0, %v3254_v55, %v3250_v56 }
0x15a3   : > { %3257 = vst [vmem:[%s4892_s2] sm:$0x1] %v3256_v57 }
0x15a4 PF: > { %s34_s5 = sadd.s32 1, %s4132_s5  }
0x15a5   : > { %p31_p7 = scmp.ge.s32.totalorder %s34_s5, 4  }
0x15a7   :  { %33 = sbr.rel (!%p31_p7) target bundleno = 10 (0xa), region = 184 }

</bundles_post_ra>
